<compile_context>
chip_gen: v7x
topology: tpu7x:2x2x1
jax: 0.10.0
libtpu: 0.0.40
codegen_flags: <defaults>
</compile_context>

<pallas_src>
import numpy as np
import jax
import jax.numpy as jnp
from jax import lax
from jax.experimental import pallas as pl
from jax.experimental.pallas import tpu as pltpu


SUBLANE = 8  # f32 sublanes per vreg


# ------------------------------------------------------------------ kernel ---

def encoder_vae_kernel(tok_ref, emb_w_ref,
                       wir_f_ref, wiz_f_ref, win_f_ref,
                       whr_f_ref, whz_f_ref, whn_f_ref,
                       br_f_ref, bz_f_ref, bin_f_ref, bhn_f_ref,
                       wir_b_ref, wiz_b_ref, win_b_ref,
                       br_b_ref, bz_b_ref, bin_b_ref, bhn_b_ref,
                       wo_ref, bo_ref, eps_ref,
                       ps_ref, z_ref):
    TB = tok_ref.shape[0]                       # T * Bp
    V, H = emb_w_ref.shape
    Bp, O = eps_ref.shape
    T = TB // Bp
    f32 = jnp.float32

    # ---- fused embedding lookup: one_hot(tokens) @ embed_w on the MXU --------
    tok = tok_ref[...]                                            # (T*Bp, 1) i32
    iota = lax.broadcasted_iota(jnp.int32, (TB, V), 1)
    one_hot = jnp.where(iota == tok, 1.0, 0.0).astype(f32)        # (T*Bp, V)
    emb_all = jnp.dot(one_hot, emb_w_ref[...],
                      preferred_element_type=f32)                 # (T*Bp, H)

    # ---- hoisted input-to-hidden gate pre-activations for ALL timesteps ------
    # (r/z biases already include b_hh; n keeps only b_ih here)
    gi_r = jnp.dot(emb_all, wir_f_ref[...], preferred_element_type=f32) + br_f_ref[...]
    gi_z = jnp.dot(emb_all, wiz_f_ref[...], preferred_element_type=f32) + bz_f_ref[...]
    gi_n = jnp.dot(emb_all, win_f_ref[...], preferred_element_type=f32) + bin_f_ref[...]

    whr = whr_f_ref[...]
    whz = whz_f_ref[...]
    whn = whn_f_ref[...]
    bhn = jnp.broadcast_to(bhn_f_ref[...], (Bp, H))   # broadcast ONCE, not per step

    # ---- forward recurrence: fully unrolled (T static), static slices --------
    h = jnp.zeros((Bp, H), f32)
    for t in range(T):
        lo = t * Bp                               # sublane-aligned static offset
        r = jax.nn.sigmoid(gi_r[lo:lo + Bp] +
                           jnp.dot(h, whr, preferred_element_type=f32))
        zg = jax.nn.sigmoid(gi_z[lo:lo + Bp] +
                            jnp.dot(h, whz, preferred_element_type=f32))
        n = jnp.tanh(gi_n[lo:lo + Bp] +
                     r * (jnp.dot(h, whn, preferred_element_type=f32) + bhn))
        h = n + zg * (h - n)                      # == (1-z)*n + z*h

    # ---- backward direction: one reverse-cell step from the zero state -------
    lo = (T - 1) * Bp
    x_last = emb_all[lo:lo + Bp]
    rb = jax.nn.sigmoid(jnp.dot(x_last, wir_b_ref[...],
                                preferred_element_type=f32) + br_b_ref[...])
    zb = jax.nn.sigmoid(jnp.dot(x_last, wiz_b_ref[...],
                                preferred_element_type=f32) + bz_b_ref[...])
    nb = jnp.tanh(jnp.dot(x_last, win_b_ref[...], preferred_element_type=f32)
                  + bin_b_ref[...] + rb * bhn_b_ref[...])
    h_bwd = nb - zb * nb                          # (1-z)*n + z*0

    h_sum = h + h_bwd                             # (Bp, H)

    # ---- o2p linear + reparameterization; two lane-dense whole-tile stores ---
    ps = jnp.dot(h_sum, wo_ref[...], preferred_element_type=f32) + bo_ref[...]
    ps_ref[...] = ps                              # (Bp, 2*O) = [mu | logvar]
    mu = ps[:, :O]
    logvar = ps[:, O:]
    z_ref[...] = mu + eps_ref[...] * jnp.exp(logvar * 0.5)


# ----------------------------------------------------------------- wrapper ---

def _full_spec(shape):
    n = len(shape)
    return pl.BlockSpec(shape, lambda i, _n=n: (0,) * _n)


def _split3(w, H):
    return w[:, :H], w[:, H:2 * H], w[:, 2 * H:]


def vae_encode(tokens, params, eps):
    """tokens: (T, B) int32, eps: (B, O) f32 -> (mu, logvar, z), each (B, O)."""
    T, B = tokens.shape
    H = params["w_ih_f"].shape[0]
    O = eps.shape[1]
    Bp = ((B + SUBLANE - 1) // SUBLANE) * SUBLANE   # pad batch to sublane multiple

    tokens_p = jnp.pad(tokens, ((0, 0), (0, Bp - B)))
    tok_flat = tokens_p.reshape(T * Bp, 1).astype(jnp.int32)
    eps_p = jnp.pad(eps, ((0, Bp - B), (0, 0))).astype(jnp.float32)

    # Split GRU weights per gate (vreg-aligned gate results) and fold biases.
    wir_f, wiz_f, win_f = _split3(params["w_ih_f"], H)
    whr_f, whz_f, whn_f = _split3(params["w_hh_f"], H)
    bir_f, biz_f, bin_f = _split3(params["b_ih_f"], H)
    bhr_f, bhz_f, bhn_f = _split3(params["b_hh_f"], H)
    br_f = bir_f + bhr_f
    bz_f = biz_f + bhz_f

    wir_b, wiz_b, win_b = _split3(params["w_ih_b"], H)
    bir_b, biz_b, bin_b = _split3(params["b_ih_b"], H)
    bhr_b, bhz_b, bhn_b = _split3(params["b_hh_b"], H)
    br_b = bir_b + bhr_b
    bz_b = biz_b + bhz_b
    # params["w_hh_b"] is intentionally unused: the single backward step that
    # feeds output[-1] starts from the zero state, so all W_hh_b terms vanish.

    kernel_inputs = (
        tok_flat, params["embed_w"].astype(jnp.float32),
        wir_f, wiz_f, win_f, whr_f, whz_f, whn_f,
        br_f, bz_f, bin_f, bhn_f,
        wir_b, wiz_b, win_b,
        br_b, bz_b, bin_b, bhn_b,
        params["w_o2p"], params["b_o2p"], eps_p,
    )

    out_shape = (
        jax.ShapeDtypeStruct((Bp, 2 * O), jnp.float32),   # ps = [mu | logvar]
        jax.ShapeDtypeStruct((Bp, O), jnp.float32),       # z
    )

    ps, z = pl.pallas_call(
        encoder_vae_kernel,
        out_shape=out_shape,
        grid=(1,),
        in_specs=[_full_spec(x.shape) for x in kernel_inputs],
        out_specs=[_full_spec((Bp, 2 * O)), _full_spec((Bp, O))],
        compiler_params=pltpu.CompilerParams(
            dimension_semantics=("arbitrary",)),
    )(*kernel_inputs)

    mu = ps[:B, :O]
    logvar = ps[:B, O:]
    return mu, logvar, z[:B]


vae_encode_jit = jax.jit(vae_encode)


# ------------------------------------------------------- deterministic init ---

def init_params(key, vocab_size, H, O):
    ks = jax.random.split(key, 11)
    s = 1.0 / np.sqrt(H)

    def u(k, shape):
        return jax.random.uniform(k, shape, jnp.float32, -s, s)

    return dict(
        embed_w=jax.random.normal(ks[0], (vocab_size, H), jnp.float32),
        # forward direction (weights stored transposed for x @ W; gate order r,z,n)
        w_ih_f=u(ks[1], (H, 3 * H)),
        w_hh_f=u(ks[2], (H, 3 * H)),
        b_ih_f=u(ks[3], (1, 3 * H)),
        b_hh_f=u(ks[4], (1, 3 * H)),
        # reverse direction
        w_ih_b=u(ks[5], (H, 3 * H)),
        w_hh_b=u(ks[6], (H, 3 * H)),
        b_ih_b=u(ks[7], (1, 3 * H)),
        b_hh_b=u(ks[8], (1, 3 * H)),
        # o2p linear: hidden -> 2 * output
        w_o2p=u(ks[9], (H, 2 * O)),
        b_o2p=u(ks[10], (1, 2 * O)),
    )


# ----------------------------------------------------------- JAX reference ---

def reference_forward(tokens, params, eps):
    emb = params["embed_w"][tokens].astype(jnp.float32)
    T, B, H = emb.shape

    def cell(x, h, wih, whh, bih, bhh):
        gi = x @ wih + bih
        gh = h @ whh + bhh
        r = jax.nn.sigmoid(gi[:, :H] + gh[:, :H])
        z = jax.nn.sigmoid(gi[:, H:2 * H] + gh[:, H:2 * H])
        n = jnp.tanh(gi[:, 2 * H:] + r * gh[:, 2 * H:])
        return (1.0 - z) * n + z * h

    h = jnp.zeros((B, H), jnp.float32)
    for t in range(T):
        h = cell(emb[t], h, params["w_ih_f"], params["w_hh_f"],
                 params["b_ih_f"], params["b_hh_f"])

    # full reverse recurrence; keep the hidden aligned to position T-1
    hb = jnp.zeros((B, H), jnp.float32)
    hb_at = {}
    for t in range(T - 1, -1, -1):
        hb = cell(emb[t], hb, params["w_ih_b"], params["w_hh_b"],
                  params["b_ih_b"], params["b_hh_b"])
        hb_at[t] = hb
    out = h + hb_at[T - 1]

    ps = out @ params["w_o2p"] + params["b_o2p"]
    O = ps.shape[1] // 2
    mu, logvar = ps[:, :O], ps[:, O:]
    z = mu + eps * jnp.exp(logvar / 2.0)
    return mu, logvar, z


# -------------------------------------------------------------------- main ---

if __name__ == "__main__":
    vocab_size = 20     # input_size
    H = 32              # hidden_size
    O = 16              # output_size
    T, B = 8, 2         # seq_len, batch

    key = jax.random.PRNGKey(0)
    kp, kt, ke = jax.random.split(key, 3)

    params = init_params(kp, vocab_size, H, O)
    tokens = jax.random.randint(kt, (T, B), 0, vocab_size, dtype=jnp.int32)
    # eps for the reparameterization sample (torch.randn equivalent) is drawn
    # with jax.random outside the kernel and fed in as an input.
    eps = jax.random.normal(ke, (B, O), dtype=jnp.float32)

    mu, logvar, z = vae_encode_jit(tokens, params, eps)
    jax.block_until_ready((mu, logvar, z))

    mu_r, lv_r, z_r = reference_forward(tokens, params, eps)
    np.testing.assert_allclose(np.asarray(mu), np.asarray(mu_r), rtol=1e-4, atol=1e-4)
    np.testing.assert_allclose(np.asarray(logvar), np.asarray(lv_r), rtol=1e-4, atol=1e-4)
    np.testing.assert_allclose(np.asarray(z), np.asarray(z_r), rtol=1e-4, atol=1e-4)

    print("KERNEL_OK")
</pallas_src>

<mosaic_0001>
module attributes {stable_mosaic.version = 11 : i64} {
  func.func @encoder_vae_kernel(%arg0: i32, %arg1: memref<64x1xi32, #tpu.memory_space<vmem>>, %arg2: memref<20x32xf32, #tpu.memory_space<vmem>>, %arg3: memref<32x32xf32, #tpu.memory_space<vmem>>, %arg4: memref<32x32xf32, #tpu.memory_space<vmem>>, %arg5: memref<32x32xf32, #tpu.memory_space<vmem>>, %arg6: memref<32x32xf32, #tpu.memory_space<vmem>>, %arg7: memref<32x32xf32, #tpu.memory_space<vmem>>, %arg8: memref<32x32xf32, #tpu.memory_space<vmem>>, %arg9: memref<1x32xf32, #tpu.memory_space<vmem>>, %arg10: memref<1x32xf32, #tpu.memory_space<vmem>>, %arg11: memref<1x32xf32, #tpu.memory_space<vmem>>, %arg12: memref<1x32xf32, #tpu.memory_space<vmem>>, %arg13: memref<32x32xf32, #tpu.memory_space<vmem>>, %arg14: memref<32x32xf32, #tpu.memory_space<vmem>>, %arg15: memref<32x32xf32, #tpu.memory_space<vmem>>, %arg16: memref<1x32xf32, #tpu.memory_space<vmem>>, %arg17: memref<1x32xf32, #tpu.memory_space<vmem>>, %arg18: memref<1x32xf32, #tpu.memory_space<vmem>>, %arg19: memref<1x32xf32, #tpu.memory_space<vmem>>, %arg20: memref<32x32xf32, #tpu.memory_space<vmem>>, %arg21: memref<1x32xf32, #tpu.memory_space<vmem>>, %arg22: memref<8x16xf32, #tpu.memory_space<vmem>>, %arg23: memref<8x32xf32, #tpu.memory_space<vmem>>, %arg24: memref<8x16xf32, #tpu.memory_space<vmem>>) attributes {dimension_semantics = [#tpu.dimension_semantics<arbitrary>], iteration_bounds = array<i64: 1>, scalar_prefetch = 0 : i64, scratch_operands = 0 : i64, tpu.core_type = #tpu.core_type<tc>, window_params = [{pipeline_mode = #tpu.pipeline_mode<synchronous>, transform_indices = @transform_0, window_bounds = array<i64: 64, 1>}, {pipeline_mode = #tpu.pipeline_mode<synchronous>, transform_indices = @transform_1, window_bounds = array<i64: 20, 32>}, {pipeline_mode = #tpu.pipeline_mode<synchronous>, transform_indices = @transform_2, window_bounds = array<i64: 32, 32>}, {pipeline_mode = #tpu.pipeline_mode<synchronous>, transform_indices = @transform_3, window_bounds = array<i64: 32, 32>}, {pipeline_mode = #tpu.pipeline_mode<synchronous>, transform_indices = @transform_4, window_bounds = array<i64: 32, 32>}, {pipeline_mode = #tpu.pipeline_mode<synchronous>, transform_indices = @transform_5, window_bounds = array<i64: 32, 32>}, {pipeline_mode = #tpu.pipeline_mode<synchronous>, transform_indices = @transform_6, window_bounds = array<i64: 32, 32>}, {pipeline_mode = #tpu.pipeline_mode<synchronous>, transform_indices = @transform_7, window_bounds = array<i64: 32, 32>}, {pipeline_mode = #tpu.pipeline_mode<synchronous>, transform_indices = @transform_8, window_bounds = array<i64: 1, 32>}, {pipeline_mode = #tpu.pipeline_mode<synchronous>, transform_indices = @transform_9, window_bounds = array<i64: 1, 32>}, {pipeline_mode = #tpu.pipeline_mode<synchronous>, transform_indices = @transform_10, window_bounds = array<i64: 1, 32>}, {pipeline_mode = #tpu.pipeline_mode<synchronous>, transform_indices = @transform_11, window_bounds = array<i64: 1, 32>}, {pipeline_mode = #tpu.pipeline_mode<synchronous>, transform_indices = @transform_12, window_bounds = array<i64: 32, 32>}, {pipeline_mode = #tpu.pipeline_mode<synchronous>, transform_indices = @transform_13, window_bounds = array<i64: 32, 32>}, {pipeline_mode = #tpu.pipeline_mode<synchronous>, transform_indices = @transform_14, window_bounds = array<i64: 32, 32>}, {pipeline_mode = #tpu.pipeline_mode<synchronous>, transform_indices = @transform_15, window_bounds = array<i64: 1, 32>}, {pipeline_mode = #tpu.pipeline_mode<synchronous>, transform_indices = @transform_16, window_bounds = array<i64: 1, 32>}, {pipeline_mode = #tpu.pipeline_mode<synchronous>, transform_indices = @transform_17, window_bounds = array<i64: 1, 32>}, {pipeline_mode = #tpu.pipeline_mode<synchronous>, transform_indices = @transform_18, window_bounds = array<i64: 1, 32>}, {pipeline_mode = #tpu.pipeline_mode<synchronous>, transform_indices = @transform_19, window_bounds = array<i64: 32, 32>}, {pipeline_mode = #tpu.pipeline_mode<synchronous>, transform_indices = @transform_20, window_bounds = array<i64: 1, 32>}, {pipeline_mode = #tpu.pipeline_mode<synchronous>, transform_indices = @transform_21, window_bounds = array<i64: 8, 16>}, {pipeline_mode = #tpu.pipeline_mode<synchronous>, transform_indices = @transform_22, window_bounds = array<i64: 8, 32>}, {pipeline_mode = #tpu.pipeline_mode<synchronous>, transform_indices = @transform_23, window_bounds = array<i64: 8, 16>}]} {
    %c0 = arith.constant 0 : index
    %c0_0 = arith.constant 0 : index
    %0 = vector.load %arg1[%c0, %c0_0] : memref<64x1xi32, #tpu.memory_space<vmem>>, vector<64x1xi32>
    %1 = tpu.iota {dimensions = array<i32: 1>} : vector<64x20xi32>
    %2 = vector.broadcast %0 : vector<64x1xi32> to vector<64x20xi32>
    %3 = arith.cmpi eq, %1, %2 : vector<64x20xi32>
    %cst = arith.constant 1.000000e+00 : f32
    %cst_1 = arith.constant 0.000000e+00 : f32
    %4 = vector.broadcast %cst : f32 to vector<64x20xf32>
    %5 = vector.broadcast %cst_1 : f32 to vector<64x20xf32>
    %6 = arith.select %3, %4, %5 : vector<64x20xi1>, vector<64x20xf32>
    %c0_2 = arith.constant 0 : index
    %c0_3 = arith.constant 0 : index
    %7 = vector.load %arg2[%c0_2, %c0_3] : memref<20x32xf32, #tpu.memory_space<vmem>>, vector<20x32xf32>
    %cst_4 = arith.constant dense<0.000000e+00> : vector<64x32xf32>
    %8 = tpu.matmul %6, %7, %cst_4 {dimension_numbers = #tpu.dot_dimension_numbers<[1], [0], [0], [1], [0, 0, 1, 1], [], []>} : vector<64x20xf32>, vector<20x32xf32>, vector<64x32xf32> -> vector<64x32xf32>
    %c0_5 = arith.constant 0 : index
    %c0_6 = arith.constant 0 : index
    %9 = vector.load %arg3[%c0_5, %c0_6] : memref<32x32xf32, #tpu.memory_space<vmem>>, vector<32x32xf32>
    %cst_7 = arith.constant dense<0.000000e+00> : vector<64x32xf32>
    %10 = tpu.matmul %8, %9, %cst_7 {dimension_numbers = #tpu.dot_dimension_numbers<[1], [0], [0], [1], [0, 0, 1, 1], [], []>} : vector<64x32xf32>, vector<32x32xf32>, vector<64x32xf32> -> vector<64x32xf32>
    %c0_8 = arith.constant 0 : index
    %c0_9 = arith.constant 0 : index
    %11 = vector.load %arg9[%c0_8, %c0_9] : memref<1x32xf32, #tpu.memory_space<vmem>>, vector<1x32xf32>
    %12 = vector.broadcast %11 : vector<1x32xf32> to vector<64x32xf32>
    %13 = arith.addf %10, %12 : vector<64x32xf32>
    %c0_10 = arith.constant 0 : index
    %c0_11 = arith.constant 0 : index
    %14 = vector.load %arg4[%c0_10, %c0_11] : memref<32x32xf32, #tpu.memory_space<vmem>>, vector<32x32xf32>
    %cst_12 = arith.constant dense<0.000000e+00> : vector<64x32xf32>
    %15 = tpu.matmul %8, %14, %cst_12 {dimension_numbers = #tpu.dot_dimension_numbers<[1], [0], [0], [1], [0, 0, 1, 1], [], []>} : vector<64x32xf32>, vector<32x32xf32>, vector<64x32xf32> -> vector<64x32xf32>
    %c0_13 = arith.constant 0 : index
    %c0_14 = arith.constant 0 : index
    %16 = vector.load %arg10[%c0_13, %c0_14] : memref<1x32xf32, #tpu.memory_space<vmem>>, vector<1x32xf32>
    %17 = vector.broadcast %16 : vector<1x32xf32> to vector<64x32xf32>
    %18 = arith.addf %15, %17 : vector<64x32xf32>
    %c0_15 = arith.constant 0 : index
    %c0_16 = arith.constant 0 : index
    %19 = vector.load %arg5[%c0_15, %c0_16] : memref<32x32xf32, #tpu.memory_space<vmem>>, vector<32x32xf32>
    %cst_17 = arith.constant dense<0.000000e+00> : vector<64x32xf32>
    %20 = tpu.matmul %8, %19, %cst_17 {dimension_numbers = #tpu.dot_dimension_numbers<[1], [0], [0], [1], [0, 0, 1, 1], [], []>} : vector<64x32xf32>, vector<32x32xf32>, vector<64x32xf32> -> vector<64x32xf32>
    %c0_18 = arith.constant 0 : index
    %c0_19 = arith.constant 0 : index
    %21 = vector.load %arg11[%c0_18, %c0_19] : memref<1x32xf32, #tpu.memory_space<vmem>>, vector<1x32xf32>
    %22 = vector.broadcast %21 : vector<1x32xf32> to vector<64x32xf32>
    %23 = arith.addf %20, %22 : vector<64x32xf32>
    %c0_20 = arith.constant 0 : index
    %c0_21 = arith.constant 0 : index
    %24 = vector.load %arg6[%c0_20, %c0_21] : memref<32x32xf32, #tpu.memory_space<vmem>>, vector<32x32xf32>
    %c0_22 = arith.constant 0 : index
    %c0_23 = arith.constant 0 : index
    %25 = vector.load %arg7[%c0_22, %c0_23] : memref<32x32xf32, #tpu.memory_space<vmem>>, vector<32x32xf32>
    %c0_24 = arith.constant 0 : index
    %c0_25 = arith.constant 0 : index
    %26 = vector.load %arg8[%c0_24, %c0_25] : memref<32x32xf32, #tpu.memory_space<vmem>>, vector<32x32xf32>
    %c0_26 = arith.constant 0 : index
    %c0_27 = arith.constant 0 : index
    %27 = vector.load %arg12[%c0_26, %c0_27] : memref<1x32xf32, #tpu.memory_space<vmem>>, vector<1x32xf32>
    %28 = vector.shape_cast %27 : vector<1x32xf32> to vector<1x32xf32>
    %29 = vector.broadcast %28 : vector<1x32xf32> to vector<8x32xf32>
    %cst_28 = arith.constant 0.000000e+00 : f32
    %30 = vector.broadcast %cst_28 : f32 to vector<8x32xf32>
    %31 = vector.extract_strided_slice %13 {offsets = [0, 0], sizes = [8, 32], strides = [1, 1]} : vector<64x32xf32> to vector<8x32xf32>
    %cst_29 = arith.constant dense<0.000000e+00> : vector<8x32xf32>
    %32 = tpu.matmul %30, %24, %cst_29 {dimension_numbers = #tpu.dot_dimension_numbers<[1], [0], [0], [1], [0, 0, 1, 1], [], []>} : vector<8x32xf32>, vector<32x32xf32>, vector<8x32xf32> -> vector<8x32xf32>
    %33 = arith.addf %31, %32 : vector<8x32xf32>
    %34 = arith.negf %33 : vector<8x32xf32>
    %35 = math.exp %34 : vector<8x32xf32>
    %cst_30 = arith.constant 1.000000e+00 : f32
    %36 = vector.broadcast %cst_30 : f32 to vector<8x32xf32>
    %37 = arith.addf %36, %35 : vector<8x32xf32>
    %38 = arith.divf %36, %37 : vector<8x32xf32>
    %39 = vector.extract_strided_slice %18 {offsets = [0, 0], sizes = [8, 32], strides = [1, 1]} : vector<64x32xf32> to vector<8x32xf32>
    %cst_31 = arith.constant dense<0.000000e+00> : vector<8x32xf32>
    %40 = tpu.matmul %30, %25, %cst_31 {dimension_numbers = #tpu.dot_dimension_numbers<[1], [0], [0], [1], [0, 0, 1, 1], [], []>} : vector<8x32xf32>, vector<32x32xf32>, vector<8x32xf32> -> vector<8x32xf32>
    %41 = arith.addf %39, %40 : vector<8x32xf32>
    %42 = arith.negf %41 : vector<8x32xf32>
    %43 = math.exp %42 : vector<8x32xf32>
    %cst_32 = arith.constant 1.000000e+00 : f32
    %44 = vector.broadcast %cst_32 : f32 to vector<8x32xf32>
    %45 = arith.addf %44, %43 : vector<8x32xf32>
    %46 = arith.divf %44, %45 : vector<8x32xf32>
    %47 = vector.extract_strided_slice %23 {offsets = [0, 0], sizes = [8, 32], strides = [1, 1]} : vector<64x32xf32> to vector<8x32xf32>
    %cst_33 = arith.constant dense<0.000000e+00> : vector<8x32xf32>
    %48 = tpu.matmul %30, %26, %cst_33 {dimension_numbers = #tpu.dot_dimension_numbers<[1], [0], [0], [1], [0, 0, 1, 1], [], []>} : vector<8x32xf32>, vector<32x32xf32>, vector<8x32xf32> -> vector<8x32xf32>
    %49 = arith.addf %48, %29 : vector<8x32xf32>
    %50 = arith.mulf %38, %49 : vector<8x32xf32>
    %51 = arith.addf %47, %50 : vector<8x32xf32>
    %52 = math.tanh %51 : vector<8x32xf32>
    %53 = arith.subf %30, %52 : vector<8x32xf32>
    %54 = arith.mulf %46, %53 : vector<8x32xf32>
    %55 = arith.addf %52, %54 : vector<8x32xf32>
    %56 = vector.extract_strided_slice %13 {offsets = [8, 0], sizes = [8, 32], strides = [1, 1]} : vector<64x32xf32> to vector<8x32xf32>
    %cst_34 = arith.constant dense<0.000000e+00> : vector<8x32xf32>
    %57 = tpu.matmul %55, %24, %cst_34 {dimension_numbers = #tpu.dot_dimension_numbers<[1], [0], [0], [1], [0, 0, 1, 1], [], []>} : vector<8x32xf32>, vector<32x32xf32>, vector<8x32xf32> -> vector<8x32xf32>
    %58 = arith.addf %56, %57 : vector<8x32xf32>
    %59 = arith.negf %58 : vector<8x32xf32>
    %60 = math.exp %59 : vector<8x32xf32>
    %cst_35 = arith.constant 1.000000e+00 : f32
    %61 = vector.broadcast %cst_35 : f32 to vector<8x32xf32>
    %62 = arith.addf %61, %60 : vector<8x32xf32>
    %63 = arith.divf %61, %62 : vector<8x32xf32>
    %64 = vector.extract_strided_slice %18 {offsets = [8, 0], sizes = [8, 32], strides = [1, 1]} : vector<64x32xf32> to vector<8x32xf32>
    %cst_36 = arith.constant dense<0.000000e+00> : vector<8x32xf32>
    %65 = tpu.matmul %55, %25, %cst_36 {dimension_numbers = #tpu.dot_dimension_numbers<[1], [0], [0], [1], [0, 0, 1, 1], [], []>} : vector<8x32xf32>, vector<32x32xf32>, vector<8x32xf32> -> vector<8x32xf32>
    %66 = arith.addf %64, %65 : vector<8x32xf32>
    %67 = arith.negf %66 : vector<8x32xf32>
    %68 = math.exp %67 : vector<8x32xf32>
    %cst_37 = arith.constant 1.000000e+00 : f32
    %69 = vector.broadcast %cst_37 : f32 to vector<8x32xf32>
    %70 = arith.addf %69, %68 : vector<8x32xf32>
    %71 = arith.divf %69, %70 : vector<8x32xf32>
    %72 = vector.extract_strided_slice %23 {offsets = [8, 0], sizes = [8, 32], strides = [1, 1]} : vector<64x32xf32> to vector<8x32xf32>
    %cst_38 = arith.constant dense<0.000000e+00> : vector<8x32xf32>
    %73 = tpu.matmul %55, %26, %cst_38 {dimension_numbers = #tpu.dot_dimension_numbers<[1], [0], [0], [1], [0, 0, 1, 1], [], []>} : vector<8x32xf32>, vector<32x32xf32>, vector<8x32xf32> -> vector<8x32xf32>
    %74 = arith.addf %73, %29 : vector<8x32xf32>
    %75 = arith.mulf %63, %74 : vector<8x32xf32>
    %76 = arith.addf %72, %75 : vector<8x32xf32>
    %77 = math.tanh %76 : vector<8x32xf32>
    %78 = arith.subf %55, %77 : vector<8x32xf32>
    %79 = arith.mulf %71, %78 : vector<8x32xf32>
    %80 = arith.addf %77, %79 : vector<8x32xf32>
    %81 = vector.extract_strided_slice %13 {offsets = [16, 0], sizes = [8, 32], strides = [1, 1]} : vector<64x32xf32> to vector<8x32xf32>
    %cst_39 = arith.constant dense<0.000000e+00> : vector<8x32xf32>
    %82 = tpu.matmul %80, %24, %cst_39 {dimension_numbers = #tpu.dot_dimension_numbers<[1], [0], [0], [1], [0, 0, 1, 1], [], []>} : vector<8x32xf32>, vector<32x32xf32>, vector<8x32xf32> -> vector<8x32xf32>
    %83 = arith.addf %81, %82 : vector<8x32xf32>
    %84 = arith.negf %83 : vector<8x32xf32>
    %85 = math.exp %84 : vector<8x32xf32>
    %cst_40 = arith.constant 1.000000e+00 : f32
    %86 = vector.broadcast %cst_40 : f32 to vector<8x32xf32>
    %87 = arith.addf %86, %85 : vector<8x32xf32>
    %88 = arith.divf %86, %87 : vector<8x32xf32>
    %89 = vector.extract_strided_slice %18 {offsets = [16, 0], sizes = [8, 32], strides = [1, 1]} : vector<64x32xf32> to vector<8x32xf32>
    %cst_41 = arith.constant dense<0.000000e+00> : vector<8x32xf32>
    %90 = tpu.matmul %80, %25, %cst_41 {dimension_numbers = #tpu.dot_dimension_numbers<[1], [0], [0], [1], [0, 0, 1, 1], [], []>} : vector<8x32xf32>, vector<32x32xf32>, vector<8x32xf32> -> vector<8x32xf32>
    %91 = arith.addf %89, %90 : vector<8x32xf32>
    %92 = arith.negf %91 : vector<8x32xf32>
    %93 = math.exp %92 : vector<8x32xf32>
    %cst_42 = arith.constant 1.000000e+00 : f32
    %94 = vector.broadcast %cst_42 : f32 to vector<8x32xf32>
    %95 = arith.addf %94, %93 : vector<8x32xf32>
    %96 = arith.divf %94, %95 : vector<8x32xf32>
    %97 = vector.extract_strided_slice %23 {offsets = [16, 0], sizes = [8, 32], strides = [1, 1]} : vector<64x32xf32> to vector<8x32xf32>
    %cst_43 = arith.constant dense<0.000000e+00> : vector<8x32xf32>
    %98 = tpu.matmul %80, %26, %cst_43 {dimension_numbers = #tpu.dot_dimension_numbers<[1], [0], [0], [1], [0, 0, 1, 1], [], []>} : vector<8x32xf32>, vector<32x32xf32>, vector<8x32xf32> -> vector<8x32xf32>
    %99 = arith.addf %98, %29 : vector<8x32xf32>
    %100 = arith.mulf %88, %99 : vector<8x32xf32>
    %101 = arith.addf %97, %100 : vector<8x32xf32>
    %102 = math.tanh %101 : vector<8x32xf32>
    %103 = arith.subf %80, %102 : vector<8x32xf32>
    %104 = arith.mulf %96, %103 : vector<8x32xf32>
    %105 = arith.addf %102, %104 : vector<8x32xf32>
    %106 = vector.extract_strided_slice %13 {offsets = [24, 0], sizes = [8, 32], strides = [1, 1]} : vector<64x32xf32> to vector<8x32xf32>
    %cst_44 = arith.constant dense<0.000000e+00> : vector<8x32xf32>
    %107 = tpu.matmul %105, %24, %cst_44 {dimension_numbers = #tpu.dot_dimension_numbers<[1], [0], [0], [1], [0, 0, 1, 1], [], []>} : vector<8x32xf32>, vector<32x32xf32>, vector<8x32xf32> -> vector<8x32xf32>
    %108 = arith.addf %106, %107 : vector<8x32xf32>
    %109 = arith.negf %108 : vector<8x32xf32>
    %110 = math.exp %109 : vector<8x32xf32>
    %cst_45 = arith.constant 1.000000e+00 : f32
    %111 = vector.broadcast %cst_45 : f32 to vector<8x32xf32>
    %112 = arith.addf %111, %110 : vector<8x32xf32>
    %113 = arith.divf %111, %112 : vector<8x32xf32>
    %114 = vector.extract_strided_slice %18 {offsets = [24, 0], sizes = [8, 32], strides = [1, 1]} : vector<64x32xf32> to vector<8x32xf32>
    %cst_46 = arith.constant dense<0.000000e+00> : vector<8x32xf32>
    %115 = tpu.matmul %105, %25, %cst_46 {dimension_numbers = #tpu.dot_dimension_numbers<[1], [0], [0], [1], [0, 0, 1, 1], [], []>} : vector<8x32xf32>, vector<32x32xf32>, vector<8x32xf32> -> vector<8x32xf32>
    %116 = arith.addf %114, %115 : vector<8x32xf32>
    %117 = arith.negf %116 : vector<8x32xf32>
    %118 = math.exp %117 : vector<8x32xf32>
    %cst_47 = arith.constant 1.000000e+00 : f32
    %119 = vector.broadcast %cst_47 : f32 to vector<8x32xf32>
    %120 = arith.addf %119, %118 : vector<8x32xf32>
    %121 = arith.divf %119, %120 : vector<8x32xf32>
    %122 = vector.extract_strided_slice %23 {offsets = [24, 0], sizes = [8, 32], strides = [1, 1]} : vector<64x32xf32> to vector<8x32xf32>
    %cst_48 = arith.constant dense<0.000000e+00> : vector<8x32xf32>
    %123 = tpu.matmul %105, %26, %cst_48 {dimension_numbers = #tpu.dot_dimension_numbers<[1], [0], [0], [1], [0, 0, 1, 1], [], []>} : vector<8x32xf32>, vector<32x32xf32>, vector<8x32xf32> -> vector<8x32xf32>
    %124 = arith.addf %123, %29 : vector<8x32xf32>
    %125 = arith.mulf %113, %124 : vector<8x32xf32>
    %126 = arith.addf %122, %125 : vector<8x32xf32>
    %127 = math.tanh %126 : vector<8x32xf32>
    %128 = arith.subf %105, %127 : vector<8x32xf32>
    %129 = arith.mulf %121, %128 : vector<8x32xf32>
    %130 = arith.addf %127, %129 : vector<8x32xf32>
    %131 = vector.extract_strided_slice %13 {offsets = [32, 0], sizes = [8, 32], strides = [1, 1]} : vector<64x32xf32> to vector<8x32xf32>
    %cst_49 = arith.constant dense<0.000000e+00> : vector<8x32xf32>
    %132 = tpu.matmul %130, %24, %cst_49 {dimension_numbers = #tpu.dot_dimension_numbers<[1], [0], [0], [1], [0, 0, 1, 1], [], []>} : vector<8x32xf32>, vector<32x32xf32>, vector<8x32xf32> -> vector<8x32xf32>
    %133 = arith.addf %131, %132 : vector<8x32xf32>
    %134 = arith.negf %133 : vector<8x32xf32>
    %135 = math.exp %134 : vector<8x32xf32>
    %cst_50 = arith.constant 1.000000e+00 : f32
    %136 = vector.broadcast %cst_50 : f32 to vector<8x32xf32>
    %137 = arith.addf %136, %135 : vector<8x32xf32>
    %138 = arith.divf %136, %137 : vector<8x32xf32>
    %139 = vector.extract_strided_slice %18 {offsets = [32, 0], sizes = [8, 32], strides = [1, 1]} : vector<64x32xf32> to vector<8x32xf32>
    %cst_51 = arith.constant dense<0.000000e+00> : vector<8x32xf32>
    %140 = tpu.matmul %130, %25, %cst_51 {dimension_numbers = #tpu.dot_dimension_numbers<[1], [0], [0], [1], [0, 0, 1, 1], [], []>} : vector<8x32xf32>, vector<32x32xf32>, vector<8x32xf32> -> vector<8x32xf32>
    %141 = arith.addf %139, %140 : vector<8x32xf32>
    %142 = arith.negf %141 : vector<8x32xf32>
    %143 = math.exp %142 : vector<8x32xf32>
    %cst_52 = arith.constant 1.000000e+00 : f32
    %144 = vector.broadcast %cst_52 : f32 to vector<8x32xf32>
    %145 = arith.addf %144, %143 : vector<8x32xf32>
    %146 = arith.divf %144, %145 : vector<8x32xf32>
    %147 = vector.extract_strided_slice %23 {offsets = [32, 0], sizes = [8, 32], strides = [1, 1]} : vector<64x32xf32> to vector<8x32xf32>
    %cst_53 = arith.constant dense<0.000000e+00> : vector<8x32xf32>
    %148 = tpu.matmul %130, %26, %cst_53 {dimension_numbers = #tpu.dot_dimension_numbers<[1], [0], [0], [1], [0, 0, 1, 1], [], []>} : vector<8x32xf32>, vector<32x32xf32>, vector<8x32xf32> -> vector<8x32xf32>
    %149 = arith.addf %148, %29 : vector<8x32xf32>
    %150 = arith.mulf %138, %149 : vector<8x32xf32>
    %151 = arith.addf %147, %150 : vector<8x32xf32>
    %152 = math.tanh %151 : vector<8x32xf32>
    %153 = arith.subf %130, %152 : vector<8x32xf32>
    %154 = arith.mulf %146, %153 : vector<8x32xf32>
    %155 = arith.addf %152, %154 : vector<8x32xf32>
    %156 = vector.extract_strided_slice %13 {offsets = [40, 0], sizes = [8, 32], strides = [1, 1]} : vector<64x32xf32> to vector<8x32xf32>
    %cst_54 = arith.constant dense<0.000000e+00> : vector<8x32xf32>
    %157 = tpu.matmul %155, %24, %cst_54 {dimension_numbers = #tpu.dot_dimension_numbers<[1], [0], [0], [1], [0, 0, 1, 1], [], []>} : vector<8x32xf32>, vector<32x32xf32>, vector<8x32xf32> -> vector<8x32xf32>
    %158 = arith.addf %156, %157 : vector<8x32xf32>
    %159 = arith.negf %158 : vector<8x32xf32>
    %160 = math.exp %159 : vector<8x32xf32>
    %cst_55 = arith.constant 1.000000e+00 : f32
    %161 = vector.broadcast %cst_55 : f32 to vector<8x32xf32>
    %162 = arith.addf %161, %160 : vector<8x32xf32>
    %163 = arith.divf %161, %162 : vector<8x32xf32>
    %164 = vector.extract_strided_slice %18 {offsets = [40, 0], sizes = [8, 32], strides = [1, 1]} : vector<64x32xf32> to vector<8x32xf32>
    %cst_56 = arith.constant dense<0.000000e+00> : vector<8x32xf32>
    %165 = tpu.matmul %155, %25, %cst_56 {dimension_numbers = #tpu.dot_dimension_numbers<[1], [0], [0], [1], [0, 0, 1, 1], [], []>} : vector<8x32xf32>, vector<32x32xf32>, vector<8x32xf32> -> vector<8x32xf32>
    %166 = arith.addf %164, %165 : vector<8x32xf32>
    %167 = arith.negf %166 : vector<8x32xf32>
    %168 = math.exp %167 : vector<8x32xf32>
    %cst_57 = arith.constant 1.000000e+00 : f32
    %169 = vector.broadcast %cst_57 : f32 to vector<8x32xf32>
    %170 = arith.addf %169, %168 : vector<8x32xf32>
    %171 = arith.divf %169, %170 : vector<8x32xf32>
    %172 = vector.extract_strided_slice %23 {offsets = [40, 0], sizes = [8, 32], strides = [1, 1]} : vector<64x32xf32> to vector<8x32xf32>
    %cst_58 = arith.constant dense<0.000000e+00> : vector<8x32xf32>
    %173 = tpu.matmul %155, %26, %cst_58 {dimension_numbers = #tpu.dot_dimension_numbers<[1], [0], [0], [1], [0, 0, 1, 1], [], []>} : vector<8x32xf32>, vector<32x32xf32>, vector<8x32xf32> -> vector<8x32xf32>
    %174 = arith.addf %173, %29 : vector<8x32xf32>
    %175 = arith.mulf %163, %174 : vector<8x32xf32>
    %176 = arith.addf %172, %175 : vector<8x32xf32>
    %177 = math.tanh %176 : vector<8x32xf32>
    %178 = arith.subf %155, %177 : vector<8x32xf32>
    %179 = arith.mulf %171, %178 : vector<8x32xf32>
    %180 = arith.addf %177, %179 : vector<8x32xf32>
    %181 = vector.extract_strided_slice %13 {offsets = [48, 0], sizes = [8, 32], strides = [1, 1]} : vector<64x32xf32> to vector<8x32xf32>
    %cst_59 = arith.constant dense<0.000000e+00> : vector<8x32xf32>
    %182 = tpu.matmul %180, %24, %cst_59 {dimension_numbers = #tpu.dot_dimension_numbers<[1], [0], [0], [1], [0, 0, 1, 1], [], []>} : vector<8x32xf32>, vector<32x32xf32>, vector<8x32xf32> -> vector<8x32xf32>
    %183 = arith.addf %181, %182 : vector<8x32xf32>
    %184 = arith.negf %183 : vector<8x32xf32>
    %185 = math.exp %184 : vector<8x32xf32>
    %cst_60 = arith.constant 1.000000e+00 : f32
    %186 = vector.broadcast %cst_60 : f32 to vector<8x32xf32>
    %187 = arith.addf %186, %185 : vector<8x32xf32>
    %188 = arith.divf %186, %187 : vector<8x32xf32>
    %189 = vector.extract_strided_slice %18 {offsets = [48, 0], sizes = [8, 32], strides = [1, 1]} : vector<64x32xf32> to vector<8x32xf32>
    %cst_61 = arith.constant dense<0.000000e+00> : vector<8x32xf32>
    %190 = tpu.matmul %180, %25, %cst_61 {dimension_numbers = #tpu.dot_dimension_numbers<[1], [0], [0], [1], [0, 0, 1, 1], [], []>} : vector<8x32xf32>, vector<32x32xf32>, vector<8x32xf32> -> vector<8x32xf32>
    %191 = arith.addf %189, %190 : vector<8x32xf32>
    %192 = arith.negf %191 : vector<8x32xf32>
    %193 = math.exp %192 : vector<8x32xf32>
    %cst_62 = arith.constant 1.000000e+00 : f32
    %194 = vector.broadcast %cst_62 : f32 to vector<8x32xf32>
    %195 = arith.addf %194, %193 : vector<8x32xf32>
    %196 = arith.divf %194, %195 : vector<8x32xf32>
    %197 = vector.extract_strided_slice %23 {offsets = [48, 0], sizes = [8, 32], strides = [1, 1]} : vector<64x32xf32> to vector<8x32xf32>
    %cst_63 = arith.constant dense<0.000000e+00> : vector<8x32xf32>
    %198 = tpu.matmul %180, %26, %cst_63 {dimension_numbers = #tpu.dot_dimension_numbers<[1], [0], [0], [1], [0, 0, 1, 1], [], []>} : vector<8x32xf32>, vector<32x32xf32>, vector<8x32xf32> -> vector<8x32xf32>
    %199 = arith.addf %198, %29 : vector<8x32xf32>
    %200 = arith.mulf %188, %199 : vector<8x32xf32>
    %201 = arith.addf %197, %200 : vector<8x32xf32>
    %202 = math.tanh %201 : vector<8x32xf32>
    %203 = arith.subf %180, %202 : vector<8x32xf32>
    %204 = arith.mulf %196, %203 : vector<8x32xf32>
    %205 = arith.addf %202, %204 : vector<8x32xf32>
    %206 = vector.extract_strided_slice %13 {offsets = [56, 0], sizes = [8, 32], strides = [1, 1]} : vector<64x32xf32> to vector<8x32xf32>
    %cst_64 = arith.constant dense<0.000000e+00> : vector<8x32xf32>
    %207 = tpu.matmul %205, %24, %cst_64 {dimension_numbers = #tpu.dot_dimension_numbers<[1], [0], [0], [1], [0, 0, 1, 1], [], []>} : vector<8x32xf32>, vector<32x32xf32>, vector<8x32xf32> -> vector<8x32xf32>
    %208 = arith.addf %206, %207 : vector<8x32xf32>
    %209 = arith.negf %208 : vector<8x32xf32>
    %210 = math.exp %209 : vector<8x32xf32>
    %cst_65 = arith.constant 1.000000e+00 : f32
    %211 = vector.broadcast %cst_65 : f32 to vector<8x32xf32>
    %212 = arith.addf %211, %210 : vector<8x32xf32>
    %213 = arith.divf %211, %212 : vector<8x32xf32>
    %214 = vector.extract_strided_slice %18 {offsets = [56, 0], sizes = [8, 32], strides = [1, 1]} : vector<64x32xf32> to vector<8x32xf32>
    %cst_66 = arith.constant dense<0.000000e+00> : vector<8x32xf32>
    %215 = tpu.matmul %205, %25, %cst_66 {dimension_numbers = #tpu.dot_dimension_numbers<[1], [0], [0], [1], [0, 0, 1, 1], [], []>} : vector<8x32xf32>, vector<32x32xf32>, vector<8x32xf32> -> vector<8x32xf32>
    %216 = arith.addf %214, %215 : vector<8x32xf32>
    %217 = arith.negf %216 : vector<8x32xf32>
    %218 = math.exp %217 : vector<8x32xf32>
    %cst_67 = arith.constant 1.000000e+00 : f32
    %219 = vector.broadcast %cst_67 : f32 to vector<8x32xf32>
    %220 = arith.addf %219, %218 : vector<8x32xf32>
    %221 = arith.divf %219, %220 : vector<8x32xf32>
    %222 = vector.extract_strided_slice %23 {offsets = [56, 0], sizes = [8, 32], strides = [1, 1]} : vector<64x32xf32> to vector<8x32xf32>
    %cst_68 = arith.constant dense<0.000000e+00> : vector<8x32xf32>
    %223 = tpu.matmul %205, %26, %cst_68 {dimension_numbers = #tpu.dot_dimension_numbers<[1], [0], [0], [1], [0, 0, 1, 1], [], []>} : vector<8x32xf32>, vector<32x32xf32>, vector<8x32xf32> -> vector<8x32xf32>
    %224 = arith.addf %223, %29 : vector<8x32xf32>
    %225 = arith.mulf %213, %224 : vector<8x32xf32>
    %226 = arith.addf %222, %225 : vector<8x32xf32>
    %227 = math.tanh %226 : vector<8x32xf32>
    %228 = arith.subf %205, %227 : vector<8x32xf32>
    %229 = arith.mulf %221, %228 : vector<8x32xf32>
    %230 = arith.addf %227, %229 : vector<8x32xf32>
    %231 = vector.extract_strided_slice %8 {offsets = [56, 0], sizes = [8, 32], strides = [1, 1]} : vector<64x32xf32> to vector<8x32xf32>
    %c0_69 = arith.constant 0 : index
    %c0_70 = arith.constant 0 : index
    %232 = vector.load %arg13[%c0_69, %c0_70] : memref<32x32xf32, #tpu.memory_space<vmem>>, vector<32x32xf32>
    %cst_71 = arith.constant dense<0.000000e+00> : vector<8x32xf32>
    %233 = tpu.matmul %231, %232, %cst_71 {dimension_numbers = #tpu.dot_dimension_numbers<[1], [0], [0], [1], [0, 0, 1, 1], [], []>} : vector<8x32xf32>, vector<32x32xf32>, vector<8x32xf32> -> vector<8x32xf32>
    %c0_72 = arith.constant 0 : index
    %c0_73 = arith.constant 0 : index
    %234 = vector.load %arg16[%c0_72, %c0_73] : memref<1x32xf32, #tpu.memory_space<vmem>>, vector<1x32xf32>
    %235 = vector.broadcast %234 : vector<1x32xf32> to vector<8x32xf32>
    %236 = arith.addf %233, %235 : vector<8x32xf32>
    %237 = arith.negf %236 : vector<8x32xf32>
    %238 = math.exp %237 : vector<8x32xf32>
    %cst_74 = arith.constant 1.000000e+00 : f32
    %239 = vector.broadcast %cst_74 : f32 to vector<8x32xf32>
    %240 = arith.addf %239, %238 : vector<8x32xf32>
    %241 = arith.divf %239, %240 : vector<8x32xf32>
    %c0_75 = arith.constant 0 : index
    %c0_76 = arith.constant 0 : index
    %242 = vector.load %arg14[%c0_75, %c0_76] : memref<32x32xf32, #tpu.memory_space<vmem>>, vector<32x32xf32>
    %cst_77 = arith.constant dense<0.000000e+00> : vector<8x32xf32>
    %243 = tpu.matmul %231, %242, %cst_77 {dimension_numbers = #tpu.dot_dimension_numbers<[1], [0], [0], [1], [0, 0, 1, 1], [], []>} : vector<8x32xf32>, vector<32x32xf32>, vector<8x32xf32> -> vector<8x32xf32>
    %c0_78 = arith.constant 0 : index
    %c0_79 = arith.constant 0 : index
    %244 = vector.load %arg17[%c0_78, %c0_79] : memref<1x32xf32, #tpu.memory_space<vmem>>, vector<1x32xf32>
    %245 = vector.broadcast %244 : vector<1x32xf32> to vector<8x32xf32>
    %246 = arith.addf %243, %245 : vector<8x32xf32>
    %247 = arith.negf %246 : vector<8x32xf32>
    %248 = math.exp %247 : vector<8x32xf32>
    %cst_80 = arith.constant 1.000000e+00 : f32
    %249 = vector.broadcast %cst_80 : f32 to vector<8x32xf32>
    %250 = arith.addf %249, %248 : vector<8x32xf32>
    %251 = arith.divf %249, %250 : vector<8x32xf32>
    %c0_81 = arith.constant 0 : index
    %c0_82 = arith.constant 0 : index
    %252 = vector.load %arg15[%c0_81, %c0_82] : memref<32x32xf32, #tpu.memory_space<vmem>>, vector<32x32xf32>
    %cst_83 = arith.constant dense<0.000000e+00> : vector<8x32xf32>
    %253 = tpu.matmul %231, %252, %cst_83 {dimension_numbers = #tpu.dot_dimension_numbers<[1], [0], [0], [1], [0, 0, 1, 1], [], []>} : vector<8x32xf32>, vector<32x32xf32>, vector<8x32xf32> -> vector<8x32xf32>
    %c0_84 = arith.constant 0 : index
    %c0_85 = arith.constant 0 : index
    %254 = vector.load %arg18[%c0_84, %c0_85] : memref<1x32xf32, #tpu.memory_space<vmem>>, vector<1x32xf32>
    %255 = vector.broadcast %254 : vector<1x32xf32> to vector<8x32xf32>
    %256 = arith.addf %253, %255 : vector<8x32xf32>
    %c0_86 = arith.constant 0 : index
    %c0_87 = arith.constant 0 : index
    %257 = vector.load %arg19[%c0_86, %c0_87] : memref<1x32xf32, #tpu.memory_space<vmem>>, vector<1x32xf32>
    %258 = vector.broadcast %257 : vector<1x32xf32> to vector<8x32xf32>
    %259 = arith.mulf %241, %258 : vector<8x32xf32>
    %260 = arith.addf %256, %259 : vector<8x32xf32>
    %261 = math.tanh %260 : vector<8x32xf32>
    %262 = arith.mulf %251, %261 : vector<8x32xf32>
    %263 = arith.subf %261, %262 : vector<8x32xf32>
    %264 = arith.addf %230, %263 : vector<8x32xf32>
    %c0_88 = arith.constant 0 : index
    %c0_89 = arith.constant 0 : index
    %265 = vector.load %arg20[%c0_88, %c0_89] : memref<32x32xf32, #tpu.memory_space<vmem>>, vector<32x32xf32>
    %cst_90 = arith.constant dense<0.000000e+00> : vector<8x32xf32>
    %266 = tpu.matmul %264, %265, %cst_90 {dimension_numbers = #tpu.dot_dimension_numbers<[1], [0], [0], [1], [0, 0, 1, 1], [], []>} : vector<8x32xf32>, vector<32x32xf32>, vector<8x32xf32> -> vector<8x32xf32>
    %c0_91 = arith.constant 0 : index
    %c0_92 = arith.constant 0 : index
    %267 = vector.load %arg21[%c0_91, %c0_92] : memref<1x32xf32, #tpu.memory_space<vmem>>, vector<1x32xf32>
    %268 = vector.broadcast %267 : vector<1x32xf32> to vector<8x32xf32>
    %269 = arith.addf %266, %268 : vector<8x32xf32>
    %c0_93 = arith.constant 0 : index
    %c0_94 = arith.constant 0 : index
    %270 = vector.load %arg23[%c0_93, %c0_94] : memref<8x32xf32, #tpu.memory_space<vmem>>, vector<8x32xf32>
    tpu.vector_store %arg23[%c0_93, %c0_94], %269 {strides = array<i32>} : memref<8x32xf32, #tpu.memory_space<vmem>>, vector<8x32xf32>,
    %271 = vector.extract_strided_slice %269 {offsets = [0, 0], sizes = [8, 16], strides = [1, 1]} : vector<8x32xf32> to vector<8x16xf32>
    %272 = vector.extract_strided_slice %269 {offsets = [0, 16], sizes = [8, 16], strides = [1, 1]} : vector<8x32xf32> to vector<8x16xf32>
    %c0_95 = arith.constant 0 : index
    %c0_96 = arith.constant 0 : index
    %273 = vector.load %arg22[%c0_95, %c0_96] : memref<8x16xf32, #tpu.memory_space<vmem>>, vector<8x16xf32>
    %cst_97 = arith.constant 5.000000e-01 : f32
    %274 = vector.broadcast %cst_97 : f32 to vector<8x16xf32>
    %275 = arith.mulf %272, %274 : vector<8x16xf32>
    %276 = math.exp %275 : vector<8x16xf32>
    %277 = arith.mulf %273, %276 : vector<8x16xf32>
    %278 = arith.addf %271, %277 : vector<8x16xf32>
    %c0_98 = arith.constant 0 : index
    %c0_99 = arith.constant 0 : index
    %279 = vector.load %arg24[%c0_98, %c0_99] : memref<8x16xf32, #tpu.memory_space<vmem>>, vector<8x16xf32>
    tpu.vector_store %arg24[%c0_98, %c0_99], %278 {strides = array<i32>} : memref<8x16xf32, #tpu.memory_space<vmem>>, vector<8x16xf32>,
    return
  }
  func.func @transform_0(%arg0: i32) -> (i32, i32) {
    %c0_i32 = arith.constant 0 : i32
    %c0_i32_0 = arith.constant 0 : i32
    %c0_i32_1 = arith.constant 0 : i32
    return %c0_i32, %c0_i32_0 : i32, i32
  }
  func.func @transform_1(%arg0: i32) -> (i32, i32) {
    %c0_i32 = arith.constant 0 : i32
    %c0_i32_0 = arith.constant 0 : i32
    %c0_i32_1 = arith.constant 0 : i32
    return %c0_i32, %c0_i32_0 : i32, i32
  }
  func.func @transform_2(%arg0: i32) -> (i32, i32) {
    %c0_i32 = arith.constant 0 : i32
    %c0_i32_0 = arith.constant 0 : i32
    %c0_i32_1 = arith.constant 0 : i32
    return %c0_i32, %c0_i32_0 : i32, i32
  }
  func.func @transform_3(%arg0: i32) -> (i32, i32) {
    %c0_i32 = arith.constant 0 : i32
    %c0_i32_0 = arith.constant 0 : i32
    %c0_i32_1 = arith.constant 0 : i32
    return %c0_i32, %c0_i32_0 : i32, i32
  }
  func.func @transform_4(%arg0: i32) -> (i32, i32) {
    %c0_i32 = arith.constant 0 : i32
    %c0_i32_0 = arith.constant 0 : i32
    %c0_i32_1 = arith.constant 0 : i32
    return %c0_i32, %c0_i32_0 : i32, i32
  }
  func.func @transform_5(%arg0: i32) -> (i32, i32) {
    %c0_i32 = arith.constant 0 : i32
    %c0_i32_0 = arith.constant 0 : i32
    %c0_i32_1 = arith.constant 0 : i32
    return %c0_i32, %c0_i32_0 : i32, i32
  }
  func.func @transform_6(%arg0: i32) -> (i32, i32) {
    %c0_i32 = arith.constant 0 : i32
    %c0_i32_0 = arith.constant 0 : i32
    %c0_i32_1 = arith.constant 0 : i32
    return %c0_i32, %c0_i32_0 : i32, i32
  }
  func.func @transform_7(%arg0: i32) -> (i32, i32) {
    %c0_i32 = arith.constant 0 : i32
    %c0_i32_0 = arith.constant 0 : i32
    %c0_i32_1 = arith.constant 0 : i32
    return %c0_i32, %c0_i32_0 : i32, i32
  }
  func.func @transform_8(%arg0: i32) -> (i32, i32) {
    %c0_i32 = arith.constant 0 : i32
    %c0_i32_0 = arith.constant 0 : i32
    %c0_i32_1 = arith.constant 0 : i32
    return %c0_i32, %c0_i32_0 : i32, i32
  }
  func.func @transform_9(%arg0: i32) -> (i32, i32) {
    %c0_i32 = arith.constant 0 : i32
    %c0_i32_0 = arith.constant 0 : i32
    %c0_i32_1 = arith.constant 0 : i32
    return %c0_i32, %c0_i32_0 : i32, i32
  }
  func.func @transform_10(%arg0: i32) -> (i32, i32) {
    %c0_i32 = arith.constant 0 : i32
    %c0_i32_0 = arith.constant 0 : i32
    %c0_i32_1 = arith.constant 0 : i32
    return %c0_i32, %c0_i32_0 : i32, i32
  }
  func.func @transform_11(%arg0: i32) -> (i32, i32) {
    %c0_i32 = arith.constant 0 : i32
    %c0_i32_0 = arith.constant 0 : i32
    %c0_i32_1 = arith.constant 0 : i32
    return %c0_i32, %c0_i32_0 : i32, i32
  }
  func.func @transform_12(%arg0: i32) -> (i32, i32) {
    %c0_i32 = arith.constant 0 : i32
    %c0_i32_0 = arith.constant 0 : i32
    %c0_i32_1 = arith.constant 0 : i32
    return %c0_i32, %c0_i32_0 : i32, i32
  }
  func.func @transform_13(%arg0: i32) -> (i32, i32) {
    %c0_i32 = arith.constant 0 : i32
    %c0_i32_0 = arith.constant 0 : i32
    %c0_i32_1 = arith.constant 0 : i32
    return %c0_i32, %c0_i32_0 : i32, i32
  }
  func.func @transform_14(%arg0: i32) -> (i32, i32) {
    %c0_i32 = arith.constant 0 : i32
    %c0_i32_0 = arith.constant 0 : i32
    %c0_i32_1 = arith.constant 0 : i32
    return %c0_i32, %c0_i32_0 : i32, i32
  }
  func.func @transform_15(%arg0: i32) -> (i32, i32) {
    %c0_i32 = arith.constant 0 : i32
    %c0_i32_0 = arith.constant 0 : i32
    %c0_i32_1 = arith.constant 0 : i32
    return %c0_i32, %c0_i32_0 : i32, i32
  }
  func.func @transform_16(%arg0: i32) -> (i32, i32) {
    %c0_i32 = arith.constant 0 : i32
    %c0_i32_0 = arith.constant 0 : i32
    %c0_i32_1 = arith.constant 0 : i32
    return %c0_i32, %c0_i32_0 : i32, i32
  }
  func.func @transform_17(%arg0: i32) -> (i32, i32) {
    %c0_i32 = arith.constant 0 : i32
    %c0_i32_0 = arith.constant 0 : i32
    %c0_i32_1 = arith.constant 0 : i32
    return %c0_i32, %c0_i32_0 : i32, i32
  }
  func.func @transform_18(%arg0: i32) -> (i32, i32) {
    %c0_i32 = arith.constant 0 : i32
    %c0_i32_0 = arith.constant 0 : i32
    %c0_i32_1 = arith.constant 0 : i32
    return %c0_i32, %c0_i32_0 : i32, i32
  }
  func.func @transform_19(%arg0: i32) -> (i32, i32) {
    %c0_i32 = arith.constant 0 : i32
    %c0_i32_0 = arith.constant 0 : i32
    %c0_i32_1 = arith.constant 0 : i32
    return %c0_i32, %c0_i32_0 : i32, i32
  }
  func.func @transform_20(%arg0: i32) -> (i32, i32) {
    %c0_i32 = arith.constant 0 : i32
    %c0_i32_0 = arith.constant 0 : i32
    %c0_i32_1 = arith.constant 0 : i32
    return %c0_i32, %c0_i32_0 : i32, i32
  }
  func.func @transform_21(%arg0: i32) -> (i32, i32) {
    %c0_i32 = arith.constant 0 : i32
    %c0_i32_0 = arith.constant 0 : i32
    %c0_i32_1 = arith.constant 0 : i32
    return %c0_i32, %c0_i32_0 : i32, i32
  }
  func.func @transform_22(%arg0: i32) -> (i32, i32) {
    %c0_i32 = arith.constant 0 : i32
    %c0_i32_0 = arith.constant 0 : i32
    %c0_i32_1 = arith.constant 0 : i32
    return %c0_i32, %c0_i32_0 : i32, i32
  }
  func.func @transform_23(%arg0: i32) -> (i32, i32) {
    %c0_i32 = arith.constant 0 : i32
    %c0_i32_0 = arith.constant 0 : i32
    %c0_i32_1 = arith.constant 0 : i32
    return %c0_i32, %c0_i32_0 : i32, i32
  }
}

</mosaic_0001>

<bundles_post_ra>
// kernel: vae_encode.1
= control target key start
LH: loop header
LB: loop body
LE: loop exit
PB: predicated region body
PF: predicated region fallthrough
CT: control target
= control target key end

     0   :  { %v3842_v0 = vmov 0   ;;  %vm151_vm0 = vcmask 1043456   ;;  %v81_v22 = vlaneseq  ;;  %vm126_vm1 = vcmask 162816   ;;  %s4484_s0 = inlined_call_operand.vmem [shape: s32[64,1], index: 0, kind: input, shape index: {}]   ;;  %s4485_s1 = inlined_call_operand.vmem [shape: f32[20,32], index: 1, kind: input, shape index: {}]   ;;  %s4486_s3 = inlined_call_operand.vmem [shape: f32[32,32], index: 3, kind: input, shape index: {}]   ;;  %s4487_s2 = inlined_call_operand.vmem [shape: f32[32,32], index: 2, kind: input, shape index: {}]   ;;  %s4488_s4 = inlined_call_operand.vmem [shape: f32[32,32], index: 4, kind: input, shape index: {}]   ;;  %s4489_s5 = inlined_call_operand.vmem [shape: f32[32,32], index: 5, kind: input, shape index: {}]   ;;  %s4490_s6 = inlined_call_operand.vmem [shape: f32[32,32], index: 6, kind: input, shape index: {}]   ;;  %s4491_s7 = inlined_call_operand.vmem [shape: f32[32,32], index: 7, kind: input, shape index: {}]   ;;  %s4492_s8 = inlined_call_operand.vmem [shape: f32[1,32], index: 8, kind: input, shape index: {}]   ;;  %s4493_s9 = inlined_call_operand.vmem [shape: f32[1,32], index: 9, kind: input, shape index: {}]   ;;  %s4494_s10 = inlined_call_operand.vmem [shape: f32[1,32], index: 10, kind: input, shape index: {}]   ;;  %s4495_s11 = inlined_call_operand.vmem [shape: f32[1,32], index: 11, kind: input, shape index: {}]   ;;  %s4496_s12 = inlined_call_operand.vmem [shape: f32[32,32], index: 12, kind: input, shape index: {}]   ;;  %s4497_s13 = inlined_call_operand.vmem [shape: f32[32,32], index: 13, kind: input, shape index: {}]   ;;  %s4498_s14 = inlined_call_operand.vmem [shape: f32[32,32], index: 14, kind: input, shape index: {}]   ;;  %s4499_s19 = inlined_call_operand.vmem [shape: f32[32,32], index: 19, kind: input, shape index: {}]   ;;  %s4500_s15 = inlined_call_operand.vmem [shape: f32[1,32], index: 15, kind: input, shape index: {}]   ;;  %s4501_s16 = inlined_call_operand.vmem [shape: f32[1,32], index: 16, kind: input, shape index: {}]   ;;  %s4502_s17 = inlined_call_operand.vmem [shape: f32[1,32], index: 17, kind: input, shape index: {}]   ;;  %s4503_s18 = inlined_call_operand.vmem [shape: f32[1,32], index: 18, kind: input, shape index: {}]   ;;  %s4504_s20 = inlined_call_operand.vmem [shape: f32[1,32], index: 20, kind: input, shape index: {}]   ;;  %s4505_s22 = inlined_call_operand.vmem [shape: f32[8,32], index: 22, kind: output, shape index: {0}]   ;;  %s4506_s21 = inlined_call_operand.vmem [shape: f32[8,16], index: 21, kind: input, shape index: {}]   ;;  %s4507_s23 = inlined_call_operand.vmem [shape: f32[8,16], index: 23, kind: output, shape index: {1}]  }
   0x1   :  { %4516 = sst [smem:[#allocation2_spill]] %s4484_s0  ;;  %3749 = vset.pattern.permute.xlu1 %v3842_v0  ;;  %3748 = vset.pattern.permute.xlu0 %v3842_v0  ;;  %v3843_v26 = vmov 0.0   ;;  %v3844_v44 = vmov 0.0|0.0   ;;  %vm271_vm10 = vcmask 261120   ;;  %vm3845_vm11 = vmmov 0  }
   0x2   :  { %4517 = sst [smem:[#allocation3_spill]] %s4485_s1  ;;  %s4524_s24 = sld [smem:[#allocation2_spill]]  ;;  %v82_v23 = vand.u32 127, %v81_v22  ;;  %vm2879_vm12 = vcmask 130048  }
   0x3   :  { %4518 = sst [smem:[#allocation4_spill]] %s4486_s3  ;;  %s4525_s28 = sld [smem:[#allocation3_spill]] }
   0x4   :  { %4519 = sst [smem:[#allocation5_spill]] %s4487_s2  ;;  %s4526_s29 = sld [smem:[#allocation4_spill]] }
   0x5   :  { %4520 = sst [smem:[#allocation6_spill]] %s4488_s4  ;;  %s4527_s25 = sld [smem:[#allocation5_spill]] }
   0x6   :  { %4521 = sst [smem:[#allocation7_spill]] %s4489_s5  ;;  %s4528_s4 = sld [smem:[#allocation6_spill]] }
   0x7   :  { %4522 = sst [smem:[#allocation8_spill]] %s4490_s6 }
   0x8   :  { %4523 = sst [smem:[#allocation9_spill]] %s4491_s7  ;;  %v75_v1 = vld [vmem:[%s4524_s24 + $0x10] sm:$0xff]  ;;  %v73_v2 = vld [vmem:[%s4524_s24] sm:$0xff]  ;;  %v76_v3 = vld [vmem:[%s4524_s24 + $0x18] sm:$0xff]  ;;  %s4530_s5 = sld [smem:[#allocation8_spill]] }
   0x9   :  { %90 = vperm.xlu1 %3749, %v75_v1   ;;  %84 = vperm.xlu0 %3748, %v73_v2   ;;  %v74_v4 = vld [vmem:[%s4524_s24 + $0x8] sm:$0xff]  ;;  %v123_v5 = vld [vmem:[%s4525_s28] sm:$0xff]  ;;  %v125_v8 = vld [vmem:[%s4525_s28 + $0x10] sm:$0xf]  ;;  %s4531_s6 = sld [smem:[#allocation9_spill]] }
   0xa   :  { %v124_v6 = vld [vmem:[%s4525_s28 + $0x8] sm:$0xff]  ;;  %v77_v10 = vld [vmem:[%s4524_s24 + $0x20] sm:$0xff]  ;;  %v80_v11 = vld [vmem:[%s4524_s24 + $0x38] sm:$0xff] }
   0xb   :  { %v3547_v7 = vpack.c.bf16 %v124_v6, %v123_v5  ;;  %v78_v9 = vld [vmem:[%s4524_s24 + $0x28] sm:$0xff]  ;;  %v79_v12 = vld [vmem:[%s4524_s24 + $0x30] sm:$0xff]  ;;  %v401_v13 = vld [vmem:[%s4526_s29] sm:$0xff]  ;;  %s4529_s24 = sld [smem:[#allocation7_spill]] }
   0xc   :  { %v402_v14 = vld [vmem:[%s4526_s29 + $0x8] sm:$0xff]  ;;  %v260_v16 = vld [vmem:[%s4527_s25] sm:$0xff]  ;;  %v262_v19 = vld [vmem:[%s4527_s25 + $0x10] sm:$0xff] }
   0xd   :  { %93 = vperm.xlu1 %3749, %v76_v3   ;;  %87 = vperm.xlu0 %3748, %v74_v4   ;;  %v3559_v15 = vpack.c.bf16 %v402_v14, %v401_v13  ;;  %v261_v17 = vld [vmem:[%s4527_s25 + $0x8] sm:$0xff]  ;;  %v263_v20 = vld [vmem:[%s4527_s25 + $0x18] sm:$0xff]  ;;  %v403_v28 = vld [vmem:[%s4526_s29 + $0x10] sm:$0xff] }
   0xe   :  { %3548 = vmatprep.subr.bf16.mxu0 %v3547_v7  ;;  %v3551_v18 = vpack.c.bf16 %v261_v17, %v260_v16  ;;  %v3555_v21 = vpack.c.bf16 %v263_v20, %v262_v19  ;;  %v404_v29 = vld [vmem:[%s4526_s29 + $0x18] sm:$0xff]  ;;  %v517_v45 = vld [vmem:[%s4528_s4] sm:$0xff]  ;;  %v518_v46 = vld [vmem:[%s4528_s4 + $0x8] sm:$0xff] }
   0xf   :  { %3550 = vmatpush3.bf16.msra.mxu0 %v3547_v7  ;;  %v3563_v33 = vpack.c.bf16 %v404_v29, %v403_v28  ;;  %v3567_v47 = vpack.c.bf16 %v518_v46, %v517_v45  ;;  %v519_v50 = vld [vmem:[%s4528_s4 + $0x10] sm:$0xff]  ;;  %v520_v51 = vld [vmem:[%s4528_s4 + $0x18] sm:$0xff]  ;;  %v637_v1 = vld [vmem:[%s4530_s5] sm:$0xff] }
  0x10   :  { %3165 = vmatprep.subr.msk.mxu0 %vm151_vm0, %v125_v8  ;;  %3552 = vmatprep.subr.bf16.mxu1 %v3551_v18  ;;  %v3571_v55 = vpack.c.bf16 %v520_v51, %v519_v50  ;;  %v638_v2 = vld [vmem:[%s4530_s5 + $0x8] sm:$0xff]  ;;  %v641_v3 = vld [vmem:[%s4531_s6] sm:$0xff]  ;;  %v639_v6 = vld [vmem:[%s4530_s5 + $0x10] sm:$0xff] }
  0x11   :  { %99 = vperm.xlu1 %3749, %v78_v9   ;;  %96 = vperm.xlu0 %3748, %v77_v10   ;;  %v633_v48 = vld [vmem:[%s4529_s24] sm:$0xff]  ;;  %v634_v49 = vld [vmem:[%s4529_s24 + $0x8] sm:$0xff]  ;;  %v635_v56 = vld [vmem:[%s4529_s24 + $0x10] sm:$0xff]  ;;  %v4109_v5 = vpack.c.bf16 %v638_v2, %v637_v1 }
  0x12   :  { %3554 = vmatpush3.bf16.msra.mxu1 %v3551_v18  ;;  %v4059_v53 = vpack.c.bf16 %v634_v49, %v633_v48  ;;  %v636_v57 = vld [vmem:[%s4529_s24 + $0x18] sm:$0xff]  ;;  %v642_v4 = vld [vmem:[%s4531_s6 + $0x8] sm:$0xff]  ;;  %v643_v9 = vld [vmem:[%s4531_s6 + $0x10] sm:$0xff] }
  0x13   :  { %3166 = vmatpush3.msk.msra.mxu0 %vm151_vm0, %v125_v8  ;;  %3556 = vmatprep.subr.bf16.mxu1 %v3555_v21  ;;  %v4072_v59 = vpack.c.bf16 %v636_v57, %v635_v56  ;;  %v640_v7 = vld [vmem:[%s4530_s5 + $0x18] sm:$0xff]  ;;  %v4117_v8 = vpack.c.bf16 %v642_v4, %v641_v3  ;;  %v2898_v13 = vld [vmem:[%s4492_s8] ss:$0 sm:$0xff] }
  0x14   :  { %3560 = vmatprep.subr.bf16.mxu0 %v3559_v15  ;;  %v644_v10 = vld [vmem:[%s4531_s6 + $0x18] sm:$0xff]  ;;  %v2907_v14 = vld [vmem:[%s4493_s9] ss:$0 sm:$0xff]  ;;  %s3846_s9 = smov 112  }
  0x15   :  { %105 = vperm.xlu1 %3749, %v80_v11   ;;  %102 = vperm.xlu0 %3748, %v79_v12   ;;  %v4129_v11 = vpack.c.bf16 %v640_v7, %v639_v6  ;;  %v4133_v12 = vpack.c.bf16 %v644_v10, %v643_v9 }
  0x16   :  { %3558 = vmatpush3.bf16.msra.mxu1 %v3555_v21 }
  0x17   :  { %3568 = vmatprep.subr.bf16.mxu1 %v3567_v47 }
  0x88   :  { %v91_v24 = vpop.permute.xlu1 %90  ;;  %v85_v25 = vpop.permute.xlu0 %84 }
  0x89   :  { %vm107_vm2 = vcmp.eq.s32.totalorder %v82_v23, %v85_v25  ;;  %vm109_vm3 = vcmp.eq.s32.totalorder %v82_v23, %v91_v24 }
  0x8a   :  { %v115_v27 = vsel %vm107_vm2, 1.0, %v3843_v26  ;;  %v117_v32 = vsel %vm109_vm3, 1.0, %v3843_v26 }
  0x8b   :  { %3167 = vmatprep.mubr.msk.f32.mxu0 %vm126_vm1, %v115_v27 }
  0x8c   :  { %v94_v30 = vpop.permute.xlu1 %93  ;;  %v88_v31 = vpop.permute.xlu0 %87 }
  0x8d   :  { %vm108_vm4 = vcmp.eq.s32.totalorder %v82_v23, %v88_v31  ;;  %vm110_vm5 = vcmp.eq.s32.totalorder %v82_v23, %v94_v30 }
  0x8e   :  { %v116_v34 = vsel %vm108_vm4, 1.0, %v3843_v26  ;;  %v118_v37 = vsel %vm110_vm5, 1.0, %v3843_v26 }
  0x8f   :  { %3168 = vmatmul.mubr.msk.f32.vlgmr.msra.gmra.mrb[0].mxu0 %vm126_vm1, %v116_v34 }
  0x90   :  { %v100_v35 = vpop.permute.xlu1 %99  ;;  %3170 = vmatprep.mubr.msk.f32.mxu0 %vm126_vm1, %v117_v32  ;;  %v97_v36 = vpop.permute.xlu0 %96  ;;  %3562 = vmatpush3.bf16.msra.mxu0 %v3559_v15 }
  0x91   :  { %vm111_vm6 = vcmp.eq.s32.totalorder %v82_v23, %v97_v36  ;;  %3564 = vmatprep.subr.bf16.mxu0 %v3563_v33  ;;  %vm112_vm7 = vcmp.eq.s32.totalorder %v82_v23, %v100_v35 }
  0x92   :  { %v119_v38 = vsel %vm111_vm6, 1.0, %v3843_v26  ;;  %v120_v41 = vsel %vm112_vm7, 1.0, %v3843_v26 }
  0x93   :  { %3171 = vmatmul.mubr.msk.f32.gmra.mrb[2].mxu0 %vm126_vm1, %v118_v37 }
  0x94   :  { %v106_v39 = vpop.permute.xlu1 %105  ;;  %3173 = vmatprep.mubr.msk.f32.mxu0 %vm126_vm1, %v119_v38  ;;  %v103_v40 = vpop.permute.xlu0 %102  ;;  %3566 = vmatpush3.bf16.msra.mxu0 %v3563_v33 }
  0x95   :  { %vm113_vm8 = vcmp.eq.s32.totalorder %v82_v23, %v103_v40  ;;  %vm114_vm9 = vcmp.eq.s32.totalorder %v82_v23, %v106_v39  ;;  %3575 = vmatprep.subr.bf16.mxu0 %v3844_v44 }
  0x96   :  { %v121_v42 = vsel %vm113_vm8, 1.0, %v3843_v26  ;;  %v122_v43 = vsel %vm114_vm9, 1.0, %v3843_v26 }
  0x97   :  { %3174 = vmatmul.mubr.msk.f32.gmra.mrb[4].mxu0 %vm126_vm1, %v120_v41 }
  0x98   :  { %3176 = vmatprep.mubr.msk.f32.mxu0 %vm126_vm1, %v121_v42 }
  0x9b   :  { %3177 = vmatmul.mubr.msk.f32.gmra.mrb[6].mxu0 %vm126_vm1, %v122_v43 }
 0x162   :  { %v3169_v52 = vpop.f32.mrb[0].mxu0 }
 0x163   :  { %v221_v54 = vpop.f32.mrb[1].mxu0 }
 0x164   :  { %3187 = vmatprep.mubr.msk.f32.mxu1 %vm271_vm10, %v221_v54  ;;  %3207 = vmatprep.mubr.msk.f32.mxu0 %vm271_vm10, %v221_v54 }
 0x165   :  { %3188 = vmatmul.mubr.msk.f32.vlgmr.msra.gmra.mrb[0].mxu1 %vm271_vm10, %v3169_v52  ;;  %3208 = vmatmul.mubr.msk.f32.vlgmr.msra.gmra.mrb[8].mxu0 %vm271_vm10, %v3169_v52 }
 0x166   :  { %3577 = vmatpush3.bf16.msra.mxu0 %v4059_v53  ;;  %v3172_v58 = vpop.f32.mrb[2].mxu0  ;;  %3570 = vmatpush3.bf16.msra.mxu1 %v3567_v47  ;;  %v2916_v47 = vld [vmem:[%s4494_s10] ss:$0 sm:$0xff] }
 0x167   :  { %v231_v60 = vpop.f32.mrb[3].mxu0  ;;  %3578 = vmatprep.subr.bf16.mxu0 %v3844_v44  ;;  %3572 = vmatprep.subr.bf16.mxu1 %v3571_v55 }
 0x168   :  { %3190 = vmatprep.mubr.msk.f32.mxu1 %vm271_vm10, %v231_v60  ;;  %3210 = vmatprep.mubr.msk.f32.mxu0 %vm271_vm10, %v231_v60 }
 0x169   :  { %3191 = vmatmul.mubr.msk.f32.gmra.mrb[2].mxu1 %vm271_vm10, %v3172_v58  ;;  %3211 = vmatmul.mubr.msk.f32.gmra.mrb[10].mxu0 %vm271_vm10, %v3172_v58 }
 0x16a   :  { %v3175_v61 = vpop.f32.mrb[4].mxu0  ;;  %3580 = vmatpush3.bf16.msra.mxu0 %v4072_v59  ;;  %3574 = vmatpush3.bf16.msra.mxu1 %v3571_v55 }
 0x16b   :  { %v241_v62 = vpop.f32.mrb[5].mxu0  ;;  %3581 = vmatprep.subr.bf16.mxu1 %v3844_v44  ;;  %3587 = vmatprep.subr.bf16.mxu0 %v3844_v44 }
 0x16c   :  { %3193 = vmatprep.mubr.msk.f32.mxu1 %vm271_vm10, %v241_v62  ;;  %3213 = vmatprep.mubr.msk.f32.mxu0 %vm271_vm10, %v241_v62 }
 0x16d   :  { %3194 = vmatmul.mubr.msk.f32.gmra.mrb[4].mxu1 %vm271_vm10, %v3175_v61  ;;  %3214 = vmatmul.mubr.msk.f32.gmra.mrb[12].mxu0 %vm271_vm10, %v3175_v61 }
 0x16e   :  { %v4086_v63 = vpop.f32.mrb[6].mxu0 }
 0x16f   :  { %v251_v0 = vpop.f32.mrb[7].mxu0 }
 0x170   :  { %3196 = vmatprep.mubr.msk.f32.mxu1 %vm271_vm10, %v251_v0  ;;  %3216 = vmatprep.mubr.msk.f32.mxu0 %vm271_vm10, %v251_v0 }
 0x171   :  { %3197 = vmatmul.mubr.msk.f32.gmra.mrb[6].mxu1 %vm271_vm10, %v4086_v63  ;;  %3217 = vmatmul.mubr.msk.f32.gmra.mrb[14].mxu0 %vm271_vm10, %v4086_v63 }
 0x172   :  { %3227 = vmatprep.mubr.msk.f32.mxu1 %vm271_vm10, %v221_v54  ;;  %3247 = vmatprep.mubr.msk.f32.mxu0 %vm3845_vm11, %v3843_v26 }
 0x175   :  { %3228 = vmatmul.mubr.msk.f32.vlgmr.msra.gmra.mrb[8].mxu1 %vm271_vm10, %v3169_v52  ;;  %3248 = vmatmul.mubr.f32.vlgmr.msra.gmra.mrb[16].mxu0 %v3843_v26 }
 0x176   :  { %3230 = vmatprep.mubr.msk.f32.mxu1 %vm271_vm10, %v231_v60  ;;  %3583 = vmatpush3.bf16.msra.mxu1 %v4109_v5 }
 0x177   :  { %3584 = vmatprep.subr.bf16.mxu1 %v3844_v44  ;;  %3589 = vmatpush3.bf16.msra.mxu0 %v4117_v8 }
 0x178   :  { %3590 = vmatprep.subr.bf16.mxu0 %v3844_v44  ;;  %3269 = vmatprep.mubr.msk.f32.mxu0 %vm3845_vm11, %v3843_v26 }
 0x179   :  { %3231 = vmatmul.mubr.msk.f32.gmra.mrb[10].mxu1 %vm271_vm10, %v3172_v58 }
 0x17a   :  { %3233 = vmatprep.mubr.msk.f32.mxu1 %vm271_vm10, %v241_v62  ;;  %3586 = vmatpush3.bf16.msra.mxu1 %v4129_v11 }
 0x17b   :  { %3592 = vmatpush3.bf16.msra.mxu0 %v4133_v12  ;;  %3593 = vmatprep.subr.bf16.mxu1 %v3844_v44 }
 0x17c   :  { %3599 = vmatprep.subr.bf16.mxu0 %v3844_v44 }
 0x17d   :  { %3234 = vmatmul.mubr.msk.f32.gmra.mrb[12].mxu1 %vm271_vm10, %v3175_v61 }
 0x17e   :  { %3236 = vmatprep.mubr.msk.f32.mxu1 %vm271_vm10, %v251_v0  ;;  %3270 = vmatmul.mubr.f32.vlgmr.msra.gmra.mrb[18].mxu0 %v3843_v26 }
 0x17f   :  { %3601 = vmatpush3.bf16.msra.mxu0 %v4109_v5  ;;  %3291 = vmatprep.mubr.msk.f32.mxu0 %vm3845_vm11, %v3843_v26 }
 0x180   :  { %3602 = vmatprep.subr.bf16.mxu0 %v3844_v44 }
 0x181   :  { %3237 = vmatmul.mubr.msk.f32.gmra.mrb[14].mxu1 %vm271_vm10, %v4086_v63 }
 0x182   :  { %3258 = vmatprep.mubr.msk.f32.mxu1 %vm3845_vm11, %v3843_v26 }
 0x183   :  { %3604 = vmatpush3.bf16.msra.mxu0 %v4129_v11 }
 0x184   :  { %3611 = vmatprep.subr.bf16.mxu0 %v3844_v44 }
 0x185   :  { %3259 = vmatmul.mubr.f32.vlgmr.msra.gmra.mrb[16].mxu1 %v3843_v26 }
 0x186   :  { %3595 = vmatpush3.bf16.msra.mxu1 %v4059_v53  ;;  %3280 = vmatprep.mubr.msk.f32.mxu1 %vm3845_vm11, %v3843_v26 }
 0x187   :  { %3596 = vmatprep.subr.bf16.mxu1 %v3844_v44 }
 0x18a   :  { %3598 = vmatpush3.bf16.msra.mxu1 %v4072_v59 }
 0x18b   :  { %3605 = vmatprep.subr.bf16.mxu1 %v3844_v44 }
 0x238   :  { %v3189_v15 = vpop.f32.mrb[0].mxu1  ;;  %v3209_v16 = vpop.f32.mrb[8].mxu0 }
 0x239   :  { %v4170_v17 = vadd.f32 %v3189_v15, %v2898_v13  ;;  %v4172_v18 = vadd.f32 %v3209_v16, %v2907_v14  ;;  %v362_v19 = vpop.f32.mrb[1].mxu1  ;;  %v478_v20 = vpop.f32.mrb[9].mxu0 }
 0x23a   :  { %v363_v48 = vadd.f32 %v2898_v13, %v362_v19  ;;  %v479_v15 = vadd.f32 %v2907_v14, %v478_v20 }
 0x23c   :  { %v3192_v21 = vpop.f32.mrb[2].mxu1  ;;  %v3212_v22 = vpop.f32.mrb[10].mxu0 }
 0x23d   :  { %v4174_v23 = vadd.f32 %v3192_v21, %v2898_v13  ;;  %v4176_v24 = vadd.f32 %v3212_v22, %v2907_v14  ;;  %v372_v25 = vpop.f32.mrb[3].mxu1  ;;  %v488_v27 = vpop.f32.mrb[11].mxu0 }
 0x23e   :  { %v4178_v28 = vadd.f32 %v2898_v13, %v372_v25  ;;  %v4180_v29 = vadd.f32 %v2907_v14, %v488_v27  ;;  %v4218_v27 = vld [vmem:[%s4495_s11] ss:$0 sm:$0xff] }
 0x240   :  { %v3195_v30 = vpop.f32.mrb[4].mxu1  ;;  %v3215_v31 = vpop.f32.mrb[12].mxu0 }
 0x241   :  { %v4182_v32 = vadd.f32 %v3195_v30, %v2898_v13  ;;  %v4184_v33 = vadd.f32 %v3215_v31, %v2907_v14  ;;  %v382_v34 = vpop.f32.mrb[5].mxu1  ;;  %v498_v35 = vpop.f32.mrb[13].mxu0 }
 0x242   :  { %v4186_v36 = vadd.f32 %v2898_v13, %v382_v34  ;;  %v4188_v37 = vadd.f32 %v2907_v14, %v498_v35 }
 0x244   :  { %v3198_v38 = vpop.f32.mrb[6].mxu1  ;;  %v3218_v39 = vpop.f32.mrb[14].mxu0 }
 0x245   :  { %v4190_v40 = vadd.f32 %v3198_v38, %v2898_v13  ;;  %v4192_v41 = vadd.f32 %v3218_v39, %v2907_v14  ;;  %v392_v42 = vpop.f32.mrb[7].mxu1  ;;  %v508_v43 = vpop.f32.mrb[15].mxu0 }
 0x246   :  { %v4194_v45 = vadd.f32 %v2898_v13, %v392_v42  ;;  %v4196_v46 = vadd.f32 %v2907_v14, %v508_v43 }
 0x248   :  { %v3229_v49 = vpop.f32.mrb[8].mxu1  ;;  %v721_v50 = vpop.f32.mrb[16].mxu0 }
 0x249   :  { %v4201_v51 = vadd.f32 %v3229_v49, %v2916_v47  ;;  %v725_v52 = vadd.f32 %v721_v50, %v363_v48  ;;  %v594_v54 = vpop.f32.mrb[9].mxu1  ;;  %v3249_v55 = vpop.f32.mrb[17].mxu0 }
 0x24a   :  { %v595_v34 = vadd.f32 %v2916_v47, %v594_v54 }
 0x24b   :  { %v2926_v56 = vmul.f32 -1.442695, %v725_v52 }
 0x24c   :  { %v3232_v57 = vpop.f32.mrb[10].mxu1 }
 0x24d   :  { %3750 = vpow2.f32 %v2926_v56  ;;  %v4203_v58 = vadd.f32 %v3232_v57, %v2916_v47  ;;  %v604_v60 = vpop.f32.mrb[11].mxu1 }
 0x24e   :  { %v4205_v61 = vadd.f32 %v2916_v47, %v604_v60 }
 0x250   :  { %v3235_v62 = vpop.f32.mrb[12].mxu1 }
 0x251   :  { %v4207_v0 = vadd.f32 %v3235_v62, %v2916_v47  ;;  %v614_v1 = vpop.f32.mrb[13].mxu1  ;;  %v875_v2 = vpop.f32.mrb[18].mxu0 }
 0x252   :  { %v4209_v3 = vadd.f32 %v2916_v47, %v614_v1  ;;  %v3271_v4 = vpop.f32.mrb[19].mxu0  ;;  %v876_v30 = vadd.f32 %v4218_v27, %v875_v2 }
 0x254   :  { %v3238_v6 = vpop.f32.mrb[14].mxu1 }
 0x255   :  { %v4211_v7 = vadd.f32 %v3238_v6, %v2916_v47  ;;  %v624_v9 = vpop.f32.mrb[15].mxu1 }
 0x256   :  { %v4213_v10 = vadd.f32 %v2916_v47, %v624_v9 }
 0x257   :  { %v3751_v13 = vpop.eup %3750 }
 0x258   :  { %v729_v16 = vadd.f32 1.0, %v3751_v13  ;;  %v798_v19 = vpop.f32.mrb[16].mxu1 }
 0x259   :  { %v802_v21 = vadd.f32 %v798_v19, %v479_v15  ;;  %v3260_v22 = vpop.f32.mrb[17].mxu1 }
 0x25a   :  { %3752 = vrcp.f32 %v729_v16 }
 0x25b   :  { %v2927_v25 = vmul.f32 -1.442695, %v802_v21 }
 0x25d   :  { %3754 = vpow2.f32 %v2927_v25 }
 0x264   :  { %v3753_v31 = vpop.eup %3752 }
 0x265   :  { %v879_v35 = vmul.f32 %v3753_v31, %v876_v30 }
 0x267   :  { %v3755_v38 = vpop.eup %3754  ;;  %v880_v39 = vadd.f32 %v879_v35, %v595_v34 }
 0x268   :  { %v806_v14 = vadd.f32 1.0, %v3755_v38 }
 0x269   :  { %3756 = vtanh.f32 %v880_v39 }
 0x26a   :  { %3758 = vrcp.f32 %v806_v14 }
 0x273   :  { %v3757_v20 = vpop.eup %3756 }
 0x274   :  { %v3759_v42 = vpop.eup %3758  ;;  %v882_v43 = vsub.f32 0.0, %v3757_v20 }
 0x276   :  { %v883_v48 = vmul.f32 %v3759_v42, %v882_v43 }
 0x278   :  { %v884_v49 = vadd.f32 %v3757_v20, %v883_v48 }
 0x27a   :  { %3281 = vmatmul.mubr.msk.f32.vlgmr.msra.gmra.mrb[18].mxu1 %vm271_vm10, %v884_v49  ;;  %3292 = vmatmul.mubr.msk.f32.vlgmr.msra.gmra.mrb[20].mxu0 %vm271_vm10, %v884_v49 }
 0x27b   :  { %3607 = vmatpush3.bf16.msra.mxu1 %v4117_v8  ;;  %3302 = vmatprep.mubr.msk.f32.mxu1 %vm3845_vm11, %v3843_v26 }
 0x27c   :  { %3608 = vmatprep.subr.bf16.mxu1 %v3844_v44  ;;  %3613 = vmatpush3.bf16.msra.mxu0 %v4059_v53 }
 0x27d   :  { %3614 = vmatprep.subr.bf16.mxu0 %v3844_v44  ;;  %3313 = vmatprep.mubr.msk.f32.mxu0 %vm3845_vm11, %v3843_v26 }
 0x27f   :  { %3610 = vmatpush3.bf16.msra.mxu1 %v4133_v12 }
 0x280   :  { %3617 = vmatprep.subr.bf16.mxu1 %v3844_v44  ;;  %3616 = vmatpush3.bf16.msra.mxu0 %v4072_v59 }
 0x281   :  { %3623 = vmatprep.subr.bf16.mxu0 %v3844_v44 }
 0x282   :  { %3303 = vmatmul.mubr.msk.f32.vlgmr.msra.gmra.mrb[20].mxu1 %vm271_vm10, %v884_v49 }
 0x283   :  { %3619 = vmatpush3.bf16.msra.mxu1 %v4109_v5  ;;  %3324 = vmatprep.mubr.msk.f32.mxu1 %vm3845_vm11, %v3843_v26 }
 0x284   :  { %3620 = vmatprep.subr.bf16.mxu1 %v3844_v44 }
 0x287   :  { %3622 = vmatpush3.bf16.msra.mxu1 %v4129_v11 }
 0x288   :  { %3629 = vmatprep.subr.bf16.mxu1 %v3844_v44 }
 0x34d   :  { %v954_v47 = vpop.f32.mrb[18].mxu1  ;;  %v1031_v50 = vpop.f32.mrb[20].mxu0 }
 0x34e   :  { %v958_v52 = vadd.f32 %v954_v47, %v4170_v17  ;;  %v1035_v54 = vadd.f32 %v1031_v50, %v4172_v18  ;;  %v3282_v55 = vpop.f32.mrb[19].mxu1  ;;  %v3293_v56 = vpop.f32.mrb[21].mxu0 }
 0x350   :  { %v2929_v57 = vmul.f32 -1.442695, %v958_v52  ;;  %v2931_v1 = vmul.f32 -1.442695, %v1035_v54 }
 0x352   :  { %3760 = vpow2.f32 %v2929_v57 }
 0x353   :  { %3762 = vpow2.f32 %v2931_v1 }
 0x355   :  { %v1108_v60 = vpop.f32.mrb[20].mxu1 }
 0x356   :  { %v3304_v62 = vpop.f32.mrb[21].mxu1  ;;  %v1109_v9 = vadd.f32 %v4218_v27, %v1108_v60 }
 0x35c   :  { %v3761_v2 = vpop.eup %3760 }
 0x35d   :  { %v962_v4 = vadd.f32 1.0, %v3761_v2  ;;  %v3763_v6 = vpop.eup %3762 }
 0x35e   :  { %v1039_v16 = vadd.f32 1.0, %v3763_v6 }
 0x35f   :  { %3764 = vrcp.f32 %v962_v4 }
 0x369   :  { %v3765_v13 = vpop.eup %3764 }
 0x36a   :  { %v1112_v15 = vmul.f32 %v3765_v13, %v1109_v9 }
 0x36c   :  { %v1113_v17 = vadd.f32 %v1112_v15, %v4201_v51 }
 0x36e   :  { %3766 = vtanh.f32 %v1113_v17 }
 0x36f   :  { %3768 = vrcp.f32 %v1039_v16 }
 0x378   :  { %v3767_v18 = vpop.eup %3766 }
 0x379   :  { %v1115_v19 = vsub.f32 %v884_v49, %v3767_v18  ;;  %v3769_v21 = vpop.eup %3768 }
 0x37b   :  { %v1116_v22 = vmul.f32 %v3769_v21, %v1115_v19 }
 0x37d   :  { %v1117_v25 = vadd.f32 %v3767_v18, %v1116_v22 }
 0x37f   :  { %3314 = vmatmul.mubr.msk.f32.vlgmr.msra.gmra.mrb[22].mxu0 %vm271_vm10, %v1117_v25  ;;  %3325 = vmatmul.mubr.msk.f32.vlgmr.msra.gmra.mrb[22].mxu1 %vm271_vm10, %v1117_v25 }
 0x380   :  { %3625 = vmatpush3.bf16.msra.mxu0 %v4117_v8  ;;  %3335 = vmatprep.mubr.msk.f32.mxu0 %vm3845_vm11, %v3843_v26 }
 0x381   :  { %3626 = vmatprep.subr.bf16.mxu0 %v3844_v44  ;;  %3631 = vmatpush3.bf16.msra.mxu1 %v4059_v53 }
 0x382   :  { %3632 = vmatprep.subr.bf16.mxu1 %v3844_v44  ;;  %3346 = vmatprep.mubr.msk.f32.mxu1 %vm3845_vm11, %v3843_v26 }
 0x384   :  { %3628 = vmatpush3.bf16.msra.mxu0 %v4133_v12 }
 0x385   :  { %3635 = vmatprep.subr.bf16.mxu0 %v3844_v44  ;;  %3634 = vmatpush3.bf16.msra.mxu1 %v4072_v59 }
 0x386   :  { %3641 = vmatprep.subr.bf16.mxu1 %v3844_v44 }
 0x387   :  { %3336 = vmatmul.mubr.msk.f32.vlgmr.msra.gmra.mrb[24].mxu0 %vm271_vm10, %v1117_v25 }
 0x388   :  { %3637 = vmatpush3.bf16.msra.mxu0 %v4109_v5  ;;  %3357 = vmatprep.mubr.msk.f32.mxu0 %vm3845_vm11, %v3843_v26 }
 0x389   :  { %3638 = vmatprep.subr.bf16.mxu0 %v3844_v44 }
 0x38c   :  { %3640 = vmatpush3.bf16.msra.mxu0 %v4129_v11 }
 0x38d   :  { %3647 = vmatprep.subr.bf16.mxu0 %v3844_v44 }
 0x452   :  { %v1187_v51 = vpop.f32.mrb[22].mxu0  ;;  %v1264_v30 = vpop.f32.mrb[22].mxu1 }
 0x453   :  { %v1191_v31 = vadd.f32 %v1187_v51, %v4178_v28  ;;  %v1268_v34 = vadd.f32 %v1264_v30, %v4180_v29  ;;  %v3315_v35 = vpop.f32.mrb[23].mxu0  ;;  %v3326_v38 = vpop.f32.mrb[23].mxu1 }
 0x455   :  { %v2934_v39 = vmul.f32 -1.442695, %v1191_v31  ;;  %v2936_v42 = vmul.f32 -1.442695, %v1268_v34 }
 0x457   :  { %3770 = vpow2.f32 %v2934_v39 }
 0x458   :  { %3772 = vpow2.f32 %v2936_v42 }
 0x45a   :  { %v1341_v14 = vpop.f32.mrb[24].mxu0 }
 0x45b   :  { %v3337_v20 = vpop.f32.mrb[25].mxu0  ;;  %v1342_v47 = vadd.f32 %v4218_v27, %v1341_v14 }
 0x461   :  { %v3771_v43 = vpop.eup %3770 }
 0x462   :  { %v1195_v48 = vadd.f32 1.0, %v3771_v43  ;;  %v3773_v49 = vpop.eup %3772 }
 0x463   :  { %v1272_v54 = vadd.f32 1.0, %v3773_v49 }
 0x464   :  { %3774 = vrcp.f32 %v1195_v48 }
 0x46e   :  { %v3775_v50 = vpop.eup %3774 }
 0x46f   :  { %v1345_v52 = vmul.f32 %v3775_v50, %v1342_v47 }
 0x471   :  { %v1346_v28 = vadd.f32 %v1345_v52, %v4205_v61 }
 0x473   :  { %3776 = vtanh.f32 %v1346_v28 }
 0x474   :  { %3778 = vrcp.f32 %v1272_v54 }
 0x47d   :  { %v3777_v29 = vpop.eup %3776 }
 0x47e   :  { %v1348_v55 = vsub.f32 %v1117_v25, %v3777_v29  ;;  %v3779_v56 = vpop.eup %3778 }
 0x480   :  { %v1349_v57 = vmul.f32 %v3779_v56, %v1348_v55 }
 0x482   :  { %v1350_v60 = vadd.f32 %v3777_v29, %v1349_v57 }
 0x484   :  { %3347 = vmatmul.mubr.msk.f32.vlgmr.msra.gmra.mrb[24].mxu1 %vm271_vm10, %v1350_v60  ;;  %3358 = vmatmul.mubr.msk.f32.vlgmr.msra.gmra.mrb[26].mxu0 %vm271_vm10, %v1350_v60 }
 0x485   :  { %3643 = vmatpush3.bf16.msra.mxu1 %v4117_v8  ;;  %3368 = vmatprep.mubr.msk.f32.mxu1 %vm3845_vm11, %v3843_v26 }
 0x486   :  { %3644 = vmatprep.subr.bf16.mxu1 %v3844_v44  ;;  %3649 = vmatpush3.bf16.msra.mxu0 %v4059_v53 }
 0x487   :  { %3650 = vmatprep.subr.bf16.mxu0 %v3844_v44  ;;  %3379 = vmatprep.mubr.msk.f32.mxu0 %vm3845_vm11, %v3843_v26 }
 0x489   :  { %3646 = vmatpush3.bf16.msra.mxu1 %v4133_v12 }
 0x48a   :  { %3653 = vmatprep.subr.bf16.mxu1 %v3844_v44  ;;  %3652 = vmatpush3.bf16.msra.mxu0 %v4072_v59 }
 0x48b   :  { %3659 = vmatprep.subr.bf16.mxu0 %v3844_v44 }
 0x48c   :  { %3369 = vmatmul.mubr.msk.f32.vlgmr.msra.gmra.mrb[26].mxu1 %vm271_vm10, %v1350_v60 }
 0x48d   :  { %3655 = vmatpush3.bf16.msra.mxu1 %v4109_v5  ;;  %3390 = vmatprep.mubr.msk.f32.mxu1 %vm3845_vm11, %v3843_v26 }
 0x48e   :  { %3656 = vmatprep.subr.bf16.mxu1 %v3844_v44 }
 0x491   :  { %3658 = vmatpush3.bf16.msra.mxu1 %v4129_v11 }
 0x492   :  { %3665 = vmatprep.subr.bf16.mxu1 %v3844_v44 }
 0x557   :  { %v1420_v61 = vpop.f32.mrb[24].mxu1  ;;  %v1497_v62 = vpop.f32.mrb[26].mxu0 }
 0x558   :  { %v1424_v1 = vadd.f32 %v1420_v61, %v4174_v23  ;;  %v1501_v2 = vadd.f32 %v1497_v62, %v4176_v24  ;;  %v3348_v4 = vpop.f32.mrb[25].mxu1  ;;  %v3359_v6 = vpop.f32.mrb[27].mxu0 }
 0x55a   :  { %v2939_v9 = vmul.f32 -1.442695, %v1424_v1  ;;  %v2941_v16 = vmul.f32 -1.442695, %v1501_v2 }
 0x55c   :  { %3780 = vpow2.f32 %v2939_v9 }
 0x55d   :  { %3782 = vpow2.f32 %v2941_v16 }
 0x55f   :  { %v1574_v13 = vpop.f32.mrb[26].mxu1 }
 0x560   :  { %v3370_v15 = vpop.f32.mrb[27].mxu1  ;;  %v1575_v21 = vadd.f32 %v4218_v27, %v1574_v13 }
 0x566   :  { %v3781_v17 = vpop.eup %3780 }
 0x567   :  { %v1428_v18 = vadd.f32 1.0, %v3781_v17  ;;  %v3783_v19 = vpop.eup %3782 }
 0x568   :  { %v1505_v51 = vadd.f32 1.0, %v3783_v19 }
 0x569   :  { %3784 = vrcp.f32 %v1428_v18 }
 0x573   :  { %v3785_v22 = vpop.eup %3784 }
 0x574   :  { %v1578_v25 = vmul.f32 %v3785_v22, %v1575_v21 }
 0x576   :  { %v1579_v23 = vadd.f32 %v1578_v25, %v4203_v58 }
 0x578   :  { %3786 = vtanh.f32 %v1579_v23 }
 0x579   :  { %3788 = vrcp.f32 %v1505_v51 }
 0x582   :  { %v3787_v24 = vpop.eup %3786 }
 0x583   :  { %v1581_v30 = vsub.f32 %v1350_v60, %v3787_v24  ;;  %v3789_v31 = vpop.eup %3788 }
 0x585   :  { %v1582_v34 = vmul.f32 %v3789_v31, %v1581_v30 }
 0x587   :  { %v1583_v35 = vadd.f32 %v3787_v24, %v1582_v34 }
 0x589   :  { %3380 = vmatmul.mubr.msk.f32.vlgmr.msra.gmra.mrb[28].mxu0 %vm271_vm10, %v1583_v35  ;;  %3391 = vmatmul.mubr.msk.f32.vlgmr.msra.gmra.mrb[28].mxu1 %vm271_vm10, %v1583_v35 }
 0x58a   :  { %3661 = vmatpush3.bf16.msra.mxu0 %v4117_v8  ;;  %3401 = vmatprep.mubr.msk.f32.mxu0 %vm3845_vm11, %v3843_v26 }
 0x58b   :  { %3662 = vmatprep.subr.bf16.mxu0 %v3844_v44  ;;  %3667 = vmatpush3.bf16.msra.mxu1 %v4059_v53 }
 0x58c   :  { %3668 = vmatprep.subr.bf16.mxu1 %v3844_v44  ;;  %3412 = vmatprep.mubr.msk.f32.mxu1 %vm3845_vm11, %v3843_v26 }
 0x58e   :  { %3664 = vmatpush3.bf16.msra.mxu0 %v4133_v12 }
 0x58f   :  { %3671 = vmatprep.subr.bf16.mxu0 %v3844_v44  ;;  %3670 = vmatpush3.bf16.msra.mxu1 %v4072_v59 }
 0x590   :  { %3677 = vmatprep.subr.bf16.mxu1 %v3844_v44 }
 0x591   :  { %3402 = vmatmul.mubr.msk.f32.vlgmr.msra.gmra.mrb[30].mxu0 %vm271_vm10, %v1583_v35 }
 0x592   :  { %3673 = vmatpush3.bf16.msra.mxu0 %v4109_v5  ;;  %3423 = vmatprep.mubr.msk.f32.mxu0 %vm3845_vm11, %v3843_v26 }
 0x593   :  { %3674 = vmatprep.subr.bf16.mxu0 %v3844_v44 }
 0x596   :  { %3676 = vmatpush3.bf16.msra.mxu0 %v4129_v11 }
 0x597   :  { %3683 = vmatprep.subr.bf16.mxu0 %v3844_v44 }
 0x65c   :  { %v1653_v58 = vpop.f32.mrb[28].mxu0  ;;  %v1730_v38 = vpop.f32.mrb[28].mxu1 }
 0x65d   :  { %v1657_v39 = vadd.f32 %v1653_v58, %v4186_v36  ;;  %v1734_v14 = vadd.f32 %v1730_v38, %v4188_v37  ;;  %v3381_v20 = vpop.f32.mrb[29].mxu0  ;;  %v3392_v42 = vpop.f32.mrb[29].mxu1 }
 0x65f   :  { %v2944_v43 = vmul.f32 -1.442695, %v1657_v39  ;;  %v2946_v47 = vmul.f32 -1.442695, %v1734_v14 }
 0x661   :  { %3790 = vpow2.f32 %v2944_v43 }
 0x662   :  { %3792 = vpow2.f32 %v2946_v47 }
 0x664   :  { %v1807_v48 = vpop.f32.mrb[30].mxu0 }
 0x665   :  { %v3403_v49 = vpop.f32.mrb[31].mxu0  ;;  %v1808_v28 = vadd.f32 %v4218_v27, %v1807_v48 }
 0x66b   :  { %v3791_v50 = vpop.eup %3790 }
 0x66c   :  { %v1661_v52 = vadd.f32 1.0, %v3791_v50  ;;  %v3793_v54 = vpop.eup %3792 }
 0x66d   :  { %v1738_v56 = vadd.f32 1.0, %v3793_v54  ;;  %v2516_v54 = vld [vmem:[%s4496_s12] sm:$0xff] }
 0x66e   :  { %3794 = vrcp.f32 %v1661_v52 }
 0x678   :  { %v3795_v29 = vpop.eup %3794 }
 0x679   :  { %v1811_v55 = vmul.f32 %v3795_v29, %v1808_v28  ;;  %v2517_v28 = vld [vmem:[%s4496_s12 + $0x8] sm:$0xff] }
 0x67b   :  { %v1812_v36 = vadd.f32 %v1811_v55, %v4209_v3 }
 0x67d   :  { %3796 = vtanh.f32 %v1812_v36 }
 0x67e   :  { %3798 = vrcp.f32 %v1738_v56  ;;  %v3720_v56 = vpack.c.bf16 %v2517_v28, %v2516_v54 }
 0x687   :  { %v3797_v37 = vpop.eup %3796 }
 0x688   :  { %v1814_v57 = vsub.f32 %v1583_v35, %v3797_v37  ;;  %v3799_v60 = vpop.eup %3798 }
 0x68a   :  { %v1815_v61 = vmul.f32 %v3799_v60, %v1814_v57  ;;  %v2603_v60 = vld [vmem:[%s4497_s13] sm:$0xff] }
 0x68c   :  { %v1816_v62 = vadd.f32 %v3797_v37, %v1815_v61  ;;  %v2519_v37 = vld [vmem:[%s4496_s12 + $0x18] sm:$0xff]  ;;  %v2604_v61 = vld [vmem:[%s4497_s13 + $0x8] sm:$0xff] }
 0x68e   :  { %3413 = vmatmul.mubr.msk.f32.vlgmr.msra.gmra.mrb[30].mxu1 %vm271_vm10, %v1816_v62  ;;  %3424 = vmatmul.mubr.msk.f32.vlgmr.msra.gmra.mrb[32].mxu0 %vm271_vm10, %v1816_v62 }
 0x68f   :  { %3679 = vmatpush3.bf16.msra.mxu1 %v4117_v8  ;;  %3434 = vmatprep.mubr.msk.f32.mxu1 %vm3845_vm11, %v3843_v26 }
 0x690   :  { %3680 = vmatprep.subr.bf16.mxu1 %v3844_v44  ;;  %3685 = vmatpush3.bf16.msra.mxu0 %v4059_v53 }
 0x691   :  { %3686 = vmatprep.subr.bf16.mxu0 %v3844_v44  ;;  %3445 = vmatprep.mubr.msk.f32.mxu0 %vm3845_vm11, %v3843_v26 }
 0x693   :  { %3682 = vmatpush3.bf16.msra.mxu1 %v4133_v12 }
 0x694   :  { %3689 = vmatprep.subr.bf16.mxu1 %v3844_v44  ;;  %3688 = vmatpush3.bf16.msra.mxu0 %v4072_v59 }
 0x695   :  { %3695 = vmatprep.subr.bf16.mxu0 %v3844_v44 }
 0x696   :  { %3435 = vmatmul.mubr.msk.f32.vlgmr.msra.gmra.mrb[32].mxu1 %vm271_vm10, %v1816_v62 }
 0x697   :  { %3691 = vmatpush3.bf16.msra.mxu1 %v4109_v5  ;;  %3456 = vmatprep.mubr.msk.f32.mxu1 %vm3845_vm11, %v3843_v26 }
 0x698   :  { %3692 = vmatprep.subr.bf16.mxu1 %v3844_v44 }
 0x69b   :  { %3694 = vmatpush3.bf16.msra.mxu1 %v4129_v11 }
 0x69c   :  { %3701 = vmatprep.subr.bf16.mxu1 %v3844_v44 }
 0x761   :  { %v1886_v3 = vpop.f32.mrb[30].mxu1  ;;  %v1963_v1 = vpop.f32.mrb[32].mxu0 }
 0x762   :  { %v1890_v2 = vadd.f32 %v1886_v3, %v4182_v32  ;;  %v1967_v4 = vadd.f32 %v1963_v1, %v4184_v33  ;;  %v3414_v6 = vpop.f32.mrb[31].mxu1  ;;  %v3425_v9 = vpop.f32.mrb[33].mxu0  ;;  %v3726_v3 = vpack.c.bf16 %v2604_v61, %v2603_v60 }
 0x763   :  { %v2692_v6 = vld [vmem:[%s4498_s14 + $0x10] sm:$0xff] }
 0x764   :  { %v2949_v13 = vmul.f32 -1.442695, %v1890_v2  ;;  %v2951_v17 = vmul.f32 -1.442695, %v1967_v4  ;;  %v2605_v2 = vld [vmem:[%s4497_s13 + $0x10] sm:$0xff]  ;;  %v2606_v4 = vld [vmem:[%s4497_s13 + $0x18] sm:$0xff] }
 0x765   :  { %v3729_v9 = vpack.c.bf16 %v2606_v4, %v2605_v2 }
 0x766   :  { %3800 = vpow2.f32 %v2949_v13 }
 0x767   :  { %3802 = vpow2.f32 %v2951_v17 }
 0x769   :  { %v2040_v15 = vpop.f32.mrb[32].mxu1 }
 0x76a   :  { %v3436_v16 = vpop.f32.mrb[33].mxu1  ;;  %v2041_v22 = vadd.f32 %v4218_v27, %v2040_v15  ;;  %v2784_v15 = vld [vmem:[%s4499_s19] sm:$0xff] }
 0x76b   :  { %v2785_v16 = vld [vmem:[%s4499_s19 + $0x8] sm:$0xff] }
 0x76c   :  { %v3738_v17 = vpack.c.bf16 %v2785_v16, %v2784_v15 }
 0x770   :  { %v3801_v18 = vpop.eup %3800 }
 0x771   :  { %v1894_v19 = vadd.f32 1.0, %v3801_v18  ;;  %v3803_v21 = vpop.eup %3802  ;;  %v2786_v18 = vld [vmem:[%s4499_s19 + $0x10] sm:$0xff] }
 0x772   :  { %v1971_v23 = vadd.f32 1.0, %v3803_v21 }
 0x773   :  { %3804 = vrcp.f32 %v1894_v19 }
 0x77d   :  { %v3805_v25 = vpop.eup %3804 }
 0x77e   :  { %v2044_v51 = vmul.f32 %v3805_v25, %v2041_v22 }
 0x780   :  { %v2045_v32 = vadd.f32 %v2044_v51, %v4207_v0 }
 0x782   :  { %3806 = vtanh.f32 %v2045_v32 }
 0x783   :  { %3808 = vrcp.f32 %v1971_v23 }
 0x78c   :  { %v3807_v33 = vpop.eup %3806 }
 0x78d   :  { %v2047_v24 = vsub.f32 %v1816_v62, %v3807_v33  ;;  %v3809_v30 = vpop.eup %3808  ;;  %v2690_v62 = vld [vmem:[%s4498_s14] sm:$0xff] }
 0x78f   :  { %v2048_v31 = vmul.f32 %v3809_v30, %v2047_v24 }
 0x791   :  { %v2049_v34 = vadd.f32 %v3807_v33, %v2048_v31 }
 0x793   :  { %3446 = vmatmul.mubr.msk.f32.vlgmr.msra.gmra.mrb[34].mxu0 %vm271_vm10, %v2049_v34  ;;  %3457 = vmatmul.mubr.msk.f32.vlgmr.msra.gmra.mrb[34].mxu1 %vm271_vm10, %v2049_v34 }
 0x794   :  { %3697 = vmatpush3.bf16.msra.mxu0 %v4117_v8  ;;  %3467 = vmatprep.mubr.msk.f32.mxu0 %vm3845_vm11, %v3843_v26 }
 0x795   :  { %3698 = vmatprep.subr.bf16.mxu0 %v3844_v44  ;;  %3703 = vmatpush3.bf16.msra.mxu1 %v4059_v53 }
 0x796   :  { %3704 = vmatprep.subr.bf16.mxu1 %v3844_v44  ;;  %3478 = vmatprep.mubr.msk.f32.mxu1 %vm3845_vm11, %v3843_v26 }
 0x798   :  { %3700 = vmatpush3.bf16.msra.mxu0 %v4133_v12 }
 0x799   :  { %3707 = vmatprep.subr.bf16.mxu0 %v3844_v44  ;;  %3706 = vmatpush3.bf16.msra.mxu1 %v4072_v59 }
 0x79a   :  { %3713 = vmatprep.subr.bf16.mxu1 %v3844_v44 }
 0x79b   :  { %3468 = vmatmul.mubr.msk.f32.vlgmr.msra.gmra.mrb[36].mxu0 %vm271_vm10, %v2049_v34 }
 0x79c   :  { %3709 = vmatpush3.bf16.msra.mxu0 %v4109_v5  ;;  %3489 = vmatprep.mubr.msk.f32.mxu0 %vm3845_vm11, %v3843_v26 }
 0x79d   :  { %3710 = vmatprep.subr.bf16.mxu0 %v3844_v44 }
 0x7a0   :  { %3712 = vmatpush3.bf16.msra.mxu0 %v4129_v11 }
 0x7a1   :  { %3719 = vmatprep.subr.bf16.mxu0 %v3844_v44 }
 0x866   :  { %v2119_v53 = vpop.f32.mrb[34].mxu0  ;;  %v2196_v0 = vpop.f32.mrb[34].mxu1 }
 0x867   :  { %v2123_v35 = vadd.f32 %v2119_v53, %v4194_v45  ;;  %v2200_v59 = vadd.f32 %v2196_v0, %v4196_v46  ;;  %v3447_v58 = vpop.f32.mrb[35].mxu0  ;;  %v3458_v38 = vpop.f32.mrb[35].mxu1 }
 0x869   :  { %v2954_v39 = vmul.f32 -1.442695, %v2123_v35  ;;  %v2956_v20 = vmul.f32 -1.442695, %v2200_v59 }
 0x86b   :  { %3810 = vpow2.f32 %v2954_v39 }
 0x86c   :  { %3812 = vpow2.f32 %v2956_v20 }
 0x86e   :  { %v2273_v5 = vpop.f32.mrb[36].mxu0 }
 0x86f   :  { %v3469_v14 = vpop.f32.mrb[37].mxu0  ;;  %v2274_v48 = vadd.f32 %v4218_v27, %v2273_v5 }
 0x875   :  { %v3811_v42 = vpop.eup %3810 }
 0x876   :  { %v2127_v43 = vadd.f32 1.0, %v3811_v42  ;;  %v3813_v11 = vpop.eup %3812 }
 0x877   :  { %v2204_v50 = vadd.f32 1.0, %v3813_v11 }
 0x878   :  { %3814 = vrcp.f32 %v2127_v43 }
 0x882   :  { %v3815_v49 = vpop.eup %3814 }
 0x883   :  { %v2277_v47 = vmul.f32 %v3815_v49, %v2274_v48 }
 0x885   :  { %v2278_v45 = vadd.f32 %v2277_v47, %v4213_v10  ;;  %v2518_v10 = vld [vmem:[%s4496_s12 + $0x10] sm:$0xff] }
 0x886   :  { %v3723_v57 = vpack.c.bf16 %v2519_v37, %v2518_v10 }
 0x887   :  { %3816 = vtanh.f32 %v2278_v45 }
 0x888   :  { %3818 = vrcp.f32 %v2204_v50 }
 0x891   :  { %v3817_v46 = vpop.eup %3816 }
 0x892   :  { %v2280_v52 = vsub.f32 %v2049_v34, %v3817_v46  ;;  %v3819_v29 = vpop.eup %3818 }
 0x894   :  { %v2281_v55 = vmul.f32 %v3819_v29, %v2280_v52  ;;  %v2971_v52 = vld [vmem:[%s4503_s18] ss:$0 sm:$0xff] }
 0x896   :  { %v4377_v36 = vadd.f32 %v3817_v46, %v2281_v55  ;;  %v2969_v46 = vld [vmem:[%s4502_s17] ss:$0 sm:$0xff] }
 0x898   :  { %3479 = vmatmul.mubr.msk.f32.vlgmr.msra.gmra.mrb[36].mxu1 %vm271_vm10, %v4377_v36  ;;  %3490 = vmatmul.mubr.msk.f32.vlgmr.msra.gmra.mrb[38].mxu0 %vm271_vm10, %v4377_v36 }
 0x899   :  { %3715 = vmatpush3.bf16.msra.mxu1 %v4117_v8  ;;  %3721 = vmatpush3.bf16.msra.mxu0 %v3720_v56  ;;  %v2691_v8 = vld [vmem:[%s4498_s14 + $0x8] sm:$0xff] }
 0x89a   :  { %3716 = vmatprep.subr.bf16.mxu1 %v3844_v44  ;;  %3722 = vmatprep.subr.bf16.mxu0 %v3844_v44  ;;  %v3732_v1 = vpack.c.bf16 %v2691_v8, %v2690_v62 }
 0x89b   :  { %3500 = vmatprep.mubr.msk.f32.mxu1 %vm3845_vm11, %v3843_v26  ;;  %3511 = vmatprep.mubr.msk.f32.mxu0 %vm3845_vm11, %v3843_v26 }
 0x89d   :  { %3718 = vmatpush3.bf16.msra.mxu1 %v4133_v12  ;;  %3724 = vmatpush3.bf16.msra.mxu0 %v3723_v57  ;;  %v2693_v12 = vld [vmem:[%s4498_s14 + $0x18] sm:$0xff] }
 0x89e   :  { %3725 = vmatprep.subr.bf16.mxu1 %v3844_v44  ;;  %3731 = vmatprep.subr.bf16.mxu0 %v3844_v44  ;;  %v3735_v13 = vpack.c.bf16 %v2693_v12, %v2692_v6 }
 0x8a0   :  { %3501 = vmatmul.mubr.msk.f32.vlgmr.msra.gmra.mrb[38].mxu1 %vm271_vm10, %v4377_v36  ;;  %3512 = vmatmul.mubr.msk.f32.vlgmr.msra.gmra.mrb[40].mxu0 %vm271_vm10, %v4086_v63 }
 0x8a1   :  { %3727 = vmatpush3.bf16.msra.mxu1 %v3726_v3  ;;  %3733 = vmatpush3.bf16.msra.mxu0 %v3732_v1  ;;  %v2972_v1 = vld [vmem:[%s4504_s20] ss:$0 sm:$0xff] }
 0x8a2   :  { %3728 = vmatprep.subr.bf16.mxu1 %v3844_v44  ;;  %3734 = vmatprep.subr.bf16.mxu0 %v3844_v44 }
 0x8a3   :  { %3522 = vmatprep.mubr.msk.f32.mxu1 %vm3845_vm11, %v3843_v26  ;;  %3533 = vmatprep.mubr.msk.f32.mxu0 %vm3845_vm11, %v3843_v26 }
 0x8a5   :  { %3730 = vmatpush3.bf16.msra.mxu1 %v3729_v9  ;;  %3736 = vmatpush3.bf16.msra.mxu0 %v3735_v13  ;;  %v2869_v13 = vld [vmem:[%s4506_s21] sm:$0xff] }
 0x8a6   :  { %3737 = vmatprep.subr.bf16.mxu1 %v3844_v44 }
 0x8a8   :  { %3523 = vmatmul.mubr.msk.f32.vlgmr.msra.gmra.mrb[40].mxu1 %vm271_vm10, %v4086_v63  ;;  %3534 = vmatmul.mubr.msk.f32.vlgmr.msra.gmra.mrb[42].mxu0 %vm271_vm10, %v4086_v63 }
 0x8a9   :  { %3544 = vmatprep.mubr.msk.f32.mxu1 %vm3845_vm11, %v3843_v26  ;;  %3739 = vmatpush3.bf16.msra.mxu1 %v3738_v17  ;;  %v2787_v26 = vld [vmem:[%s4499_s19 + $0x18] sm:$0xff] }
 0x8aa   :  { %3740 = vmatprep.subr.bf16.mxu1 %v3844_v44  ;;  %v3741_v63 = vpack.c.bf16 %v2787_v26, %v2786_v18  ;;  %v2963_v44 = vld [vmem:[%s4500_s15] ss:$0 sm:$0xff] }
 0x8ad   :  { %3742 = vmatpush3.bf16.msra.mxu1 %v3741_v63 }
 0x96b   :  { %v2352_v19 = vpop.f32.mrb[36].mxu1  ;;  %v2429_v21 = vpop.f32.mrb[38].mxu0 }
 0x96c   :  { %v2356_v22 = vadd.f32 %v2352_v19, %v4190_v40  ;;  %v2433_v25 = vadd.f32 %v2429_v21, %v4192_v41  ;;  %v3480_v51 = vpop.f32.mrb[37].mxu1  ;;  %v3491_v23 = vpop.f32.mrb[39].mxu0  ;;  %v2966_v40 = vld [vmem:[%s4501_s16] ss:$0 sm:$0xff] }
 0x96e   :  { %v2959_v32 = vmul.f32 -1.442695, %v2356_v22  ;;  %v2961_v0 = vmul.f32 -1.442695, %v2433_v25 }
 0x970   :  { %3820 = vpow2.f32 %v2959_v32 }
 0x973   :  { %v2506_v33 = vpop.f32.mrb[38].mxu1  ;;  %v2593_v24 = vpop.f32.mrb[40].mxu0 }
 0x974   :  { %v2594_v30 = vadd.f32 %v2963_v44, %v2593_v24  ;;  %v3502_v31 = vpop.f32.mrb[39].mxu1  ;;  %v3513_v34 = vpop.f32.mrb[41].mxu0  ;;  %v2507_v11 = vadd.f32 %v4218_v27, %v2506_v33 }
 0x976   :  { %v2965_v53 = vmul.f32 -1.442695, %v2594_v30 }
 0x978   :  { %3822 = vpow2.f32 %v2965_v53 }
 0x979   :  { %3824 = vpow2.f32 %v2961_v0 }
 0x97a   :  { %v3821_v41 = vpop.eup %3820 }
 0x97b   :  { %v2360_v35 = vadd.f32 1.0, %v3821_v41  ;;  %v2680_v59 = vpop.f32.mrb[40].mxu1  ;;  %v2767_v58 = vpop.f32.mrb[42].mxu0 }
 0x97c   :  { %v2681_v38 = vadd.f32 %v2966_v40, %v2680_v59  ;;  %v3524_v39 = vpop.f32.mrb[41].mxu1  ;;  %v3535_v5 = vpop.f32.mrb[43].mxu0  ;;  %v2768_v29 = vadd.f32 %v2969_v46, %v2767_v58 }
 0x97d   :  { %3826 = vrcp.f32 %v2360_v35 }
 0x97e   :  { %v2968_v14 = vmul.f32 -1.442695, %v2681_v38 }
 0x980   :  { %3828 = vpow2.f32 %v2968_v14 }
 0x982   :  { %v3823_v20 = vpop.eup %3822 }
 0x983   :  { %v2600_v42 = vadd.f32 1.0, %v3823_v20  ;;  %v3825_v43 = vpop.eup %3824 }
 0x984   :  { %v2437_v47 = vadd.f32 1.0, %v3825_v43 }
 0x985   :  { %3830 = vrcp.f32 %v2600_v42 }
 0x987   :  { %v3827_v48 = vpop.eup %3826 }
 0x988   :  { %v2510_v49 = vmul.f32 %v3827_v48, %v2507_v11 }
 0x98a   :  { %v2511_v50 = vadd.f32 %v2510_v49, %v4211_v7  ;;  %v3829_v45 = vpop.eup %3828 }
 0x98b   :  { %v2687_v28 = vadd.f32 1.0, %v3829_v45 }
 0x98c   :  { %3832 = vtanh.f32 %v2511_v50 }
 0x98d   :  { %3834 = vrcp.f32 %v2437_v47 }
 0x98e   :  { %3836 = vrcp.f32 %v2687_v28 }
 0x98f   :  { %v3831_v54 = vpop.eup %3830 }
 0x990   :  { %v2778_v27 = vmul.f32 %v3831_v54, %v2971_v52 }
 0x992   :  { %v2779_v55 = vadd.f32 %v2778_v27, %v2768_v29 }
 0x994   :  { %3838 = vtanh.f32 %v2779_v55 }
 0x996   :  { %v3833_v56 = vpop.eup %3832 }
 0x997   :  { %v2513_v7 = vsub.f32 %v4377_v36, %v3833_v56  ;;  %v3835_v10 = vpop.eup %3834 }
 0x998   :  { %v3837_v60 = vpop.eup %3836 }
 0x999   :  { %v2514_v37 = vmul.f32 %v3835_v10, %v2513_v7 }
 0x99b   :  { %v2515_v57 = vadd.f32 %v3833_v56, %v2514_v37 }
 0x99e   :  { %v3839_v61 = vpop.eup %3838 }
 0x99f   :  { %v2781_v62 = vmul.f32 %v3839_v61, %v3837_v60 }
 0x9a1   :  { %v2782_v8 = vsub.f32 %v3839_v61, %v2781_v62 }
 0x9a3   :  { %v2783_v3 = vadd.f32 %v2782_v8, %v2515_v57 }
 0x9a5   :  { %3545 = vmatmul.mubr.msk.f32.vlgmr.msra.gmra.mrb[42].mxu1 %vm271_vm10, %v2783_v3 }
 0xa78   :  { %v2864_v2 = vpop.f32.mrb[42].mxu1 }
 0xa79   :  { %v2865_v4 = vadd.f32 %v2972_v1, %v2864_v2  ;;  %v3546_v6 = vpop.f32.mrb[43].mxu1 }
 0xa7b   :  { %2868 = vst.msk [vmem:[%s4505_s22] sm:$0xff] %vm271_vm10, %v2865_v4  ;;  %v2870_v36 = vmul.f32 0.5, %v2865_v4 }
 0xa7d   :  { %v2871_v12 = vmul.f32 1.442695, %v2870_v36 }
 0xa7f   :  { %3840 = vpow2.f32 %v2871_v12 }
 0xa89   :  { %v3841_v9 = vpop.eup %3840 }
 0xa8a   :  { %2874 = vrot.lane.b32.xlu0 %v3841_v9, %s3846_s9 }
 0xafc   :  { %v2875_v15 = vpop.permute.xlu0 %2874 }
 0xafd   :  { %v2877_v16 = vmul.f32 %v2875_v15, %v2869_v13 }
 0xaff   :  { %v2878_v17 = vadd.f32 %v2877_v16, %v2865_v4 }
 0xb01   :  { %2880 = vst.msk [vmem:[%s4507_s23] sm:$0xff] %vm2879_vm12, %v2878_v17 }

</bundles_post_ra>
